<compile_context>
chip_gen: v7x
topology: tpu7x:2x2x1
jax: 0.10.0
libtpu: 0.0.40
codegen_flags: <defaults>
</compile_context>

<pallas_src>
import numpy as np

import jax
import jax.numpy as jnp
from jax.experimental import pallas as pl
from jax.experimental.pallas import tpu as pltpu


def _make_reblock_kernel(K: int, dil: int, L: int, P: int, NB: int):
    """Fused ReBlock kernel for static taps K, dilation, length L, pad P, block NB."""
    Lp = L + 2 * P            # per-sample padded length
    Rc = NB * Lp - 2 * P      # conv-output rows computed per block (incl. junk halo rows)

    def kernel(x_ref, pool_ref,
               w1_ref, sc1_ref, sh1_ref,
               w2_ref, sc2_ref, sh2_ref,
               wse1_ref, bse1_ref, wse2_ref, bse2_ref,
               out_ref, pad_ref):
        C = out_ref.shape[1]
        zeros_halo = jnp.zeros((2 * P, C), jnp.float32)
        zeros_edge = jnp.zeros((P, C), jnp.float32)

        # ---- build the per-sample zero-padded x in VMEM (zero halo rows only) ----
        pad_ref[0:P, :] = zeros_edge
        for i in range(NB - 1):
            s = i * Lp + P + L
            pad_ref[s:s + 2 * P, :] = zeros_halo
        pad_ref[NB * Lp - P:NB * Lp, :] = zeros_edge
        for i in range(NB):
            pad_ref[i * Lp + P:i * Lp + P + L, :] = x_ref[i * L:(i + 1) * L, :]

        def conv_bn_relu(w_ref, sc_ref, sh_ref):
            # Dilated K-tap conv as K per-tap matmuls over the whole row block.
            # acc is initialized by the k=0 tap (no zeros+add); slice offsets are
            # compile-time constants. Rows in the inter-sample halos are junk and
            # are masked out / skipped downstream.
            acc = jnp.dot(pad_ref[0:Rc, :], w_ref[0],
                          preferred_element_type=jnp.float32)
            for k in range(1, K):
                acc = acc + jnp.dot(pad_ref[k * dil:k * dil + Rc, :], w_ref[k],
                                    preferred_element_type=jnp.float32)
            # conv bias + BN(running stats) folded into scale/shift, then ReLU.
            return jnp.maximum(acc * sc_ref[...] + sh_ref[...], 0.0)

        # ---- cbr1 ----
        y1 = conv_bn_relu(w1_ref, sc1_ref, sh1_ref)                  # (Rc, C)

        # Reuse pad_ref as the padded y1 buffer: one store shifted by P drops each
        # sample's rows back into its padded slot; re-zero only the inter-sample
        # halos (edge halos are untouched and still zero).
        pad_ref[P:P + Rc, :] = y1
        for i in range(NB - 1):
            s = i * Lp + P + L
            pad_ref[s:s + 2 * P, :] = zeros_halo

        # ---- cbr2 ----
        y2 = conv_bn_relu(w2_ref, sc2_ref, sh2_ref)                  # (Rc, C)

        # ---- SeBlock, batched over the NB samples of this block ----
        # pool_ref is a constant (NB, Rc) matrix with 1/L at each sample's real
        # rows and 0 elsewhere == per-sample adaptive_avg_pool1d(., 1) in one
        # matmul (and zeroes the junk halo rows).
        pooled = jnp.dot(pool_ref[...], y2,
                         preferred_element_type=jnp.float32)         # (NB, C)
        h = jnp.maximum(jnp.dot(pooled, wse1_ref[...],
                                preferred_element_type=jnp.float32)
                        + bse1_ref[...], 0.0)                        # (NB, C//8)
        se = jax.nn.sigmoid(jnp.dot(h, wse2_ref[...],
                                    preferred_element_type=jnp.float32)
                            + bse2_ref[...])                         # (NB, C)

        # Stash y2 in pad_ref so the per-sample output writes read plain
        # statically-sliced VMEM refs (halos no longer needed).
        pad_ref[P:P + Rc, :] = y2

        # ---- dropout (eval: identity) + residual add ----
        for i in range(NB):
            out_ref[i * L:(i + 1) * L, :] = (
                x_ref[i * L:(i + 1) * L, :]
                + pad_ref[i * Lp + P:i * Lp + P + L, :]
                + se[i:i + 1, :]
            ).astype(out_ref.dtype)

    return kernel


def _pick_block_batch(N: int, L: int, target_rows: int = 1024) -> int:
    """Largest divisor of N whose block stays under `target_rows` rows while
    keeping >= 2 grid steps when possible (so both v7x TensorCores get work)."""
    nb = 1
    for d in range(1, N + 1):
        if N % d == 0 and d * L <= target_rows and (N // d >= 2 or N == 1):
            nb = d
    return nb


def reblock_forward(x_ncl, params, *, kernel_size: int, dilation: int,
                    padding: int = 3, block_batch=None):
    """ReBlock forward (eval mode). x_ncl: (N, C, L) float32 (PyTorch layout)."""
    N, C, L = x_ncl.shape
    K, dil, P = kernel_size, dilation, padding
    assert (K - 1) * dil == 2 * P, "residual add requires a length-preserving conv"
    eps = 1e-5
    C8 = C // 8

    NB = block_batch if block_batch is not None else _pick_block_batch(N, L)
    assert N % NB == 0
    Lp = L + 2 * P
    Rc = NB * Lp - 2 * P
    RB = NB * L

    # ----- parameter preprocessing (plain-JAX glue, exact algebra) -----
    # conv weights (C_out, C_in, K) -> (K, C_in, C_out) so each tap is a matmul.
    w1 = jnp.transpose(params["w1"], (2, 1, 0))
    w2 = jnp.transpose(params["w2"], (2, 1, 0))
    # fold conv bias + BN(running stats) into per-channel scale/shift.
    inv1 = params["g1"] / jnp.sqrt(params["v1"] + eps)
    sc1 = inv1[None, :]
    sh1 = (params["be1"] - params["m1"] * inv1 + params["b1"] * inv1)[None, :]
    inv2 = params["g2"] / jnp.sqrt(params["v2"] + eps)
    sc2 = inv2[None, :]
    sh2 = (params["be2"] - params["m2"] * inv2 + params["b2"] * inv2)[None, :]
    # SE 1x1 convs -> dense matrices (right-multiply in channels-last layout).
    wse1 = jnp.transpose(params["wse1"][:, :, 0], (1, 0))   # (C, C//8)
    bse1 = params["bse1"][None, :]                          # (1, C//8)
    wse2 = jnp.transpose(params["wse2"][:, :, 0], (1, 0))   # (C//8, C)
    bse2 = params["bse2"][None, :]                          # (1, C)

    # constant per-sample average-pooling matrix (NB, Rc)
    pool_np = np.zeros((NB, Rc), np.float32)
    for i in range(NB):
        pool_np[i, i * Lp:i * Lp + L] = 1.0 / L
    pool_mat = jnp.asarray(pool_np)

    # ----- layout glue: NCL -> rows-major (N*L, C); x hits HBM exactly once -----
    x_rows = jnp.transpose(x_ncl, (0, 2, 1)).astype(jnp.float32).reshape(N * L, C)

    kernel = _make_reblock_kernel(K, dil, L, P, NB)
    full = lambda shape: pl.BlockSpec(shape, lambda n: (0,) * len(shape))

    cost = pl.CostEstimate(
        flops=4 * N * L * C * C * K + 2 * N * L * C + 4 * N * C * C8,
        transcendentals=N * C,
        bytes_accessed=4 * (2 * N * L * C + 2 * K * C * C + 2 * C * C8 + 6 * C),
    )

    out_rows = pl.pallas_call(
        kernel,
        out_shape=jax.ShapeDtypeStruct((N * L, C), jnp.float32),
        grid_spec=pltpu.PrefetchScalarGridSpec(
            num_scalar_prefetch=0,
            grid=(N // NB,),
            in_specs=[
                pl.BlockSpec((RB, C), lambda n: (n, 0)),          # x rows
                full((NB, Rc)),                                   # pooling matrix
                full((K, C, C)), full((1, C)), full((1, C)),      # conv1 / bn1
                full((K, C, C)), full((1, C)), full((1, C)),      # conv2 / bn2
                full((C, C8)), full((1, C8)),                     # SE conv1
                full((C8, C)), full((1, C)),                      # SE conv2
            ],
            out_specs=pl.BlockSpec((RB, C), lambda n: (n, 0)),
            scratch_shapes=[pltpu.VMEM((NB * Lp, C), jnp.float32)],  # reused pad buffer
        ),
        compiler_params=pltpu.CompilerParams(dimension_semantics=("parallel",)),
        cost_estimate=cost,
    )(x_rows, pool_mat, w1, sc1, sh1, w2, sc2, sh2, wse1, bse1, wse2, bse2)

    return jnp.transpose(out_rows.reshape(N, L, C), (0, 2, 1))     # back to (N, C, L)


def reblock_reference(x, p, *, kernel_size, dilation, padding=3, eps=1e-5):
    """Pure-JAX reference matching PyTorch eval-mode forward (NCL layout)."""
    dn = ("NCW", "OIW", "NCW")

    def conv1d(x, w, b):
        y = jax.lax.conv_general_dilated(
            x, w, window_strides=(1,), padding=[(padding, padding)],
            rhs_dilation=(dilation,), dimension_numbers=dn)
        return y + b[None, :, None]

    def bn(x, g, be, m, v):
        return (x - m[None, :, None]) / jnp.sqrt(v[None, :, None] + eps) \
            * g[None, :, None] + be[None, :, None]

    y1 = jax.nn.relu(bn(conv1d(x, p["w1"], p["b1"]), p["g1"], p["be1"], p["m1"], p["v1"]))
    y2 = jax.nn.relu(bn(conv1d(y1, p["w2"], p["b2"]), p["g2"], p["be2"], p["m2"], p["v2"]))
    pooled = jnp.mean(y2, axis=2, keepdims=True)
    h = jax.nn.relu(jnp.einsum("oc,ncl->nol", p["wse1"][:, :, 0], pooled)
                    + p["bse1"][None, :, None])
    se = jax.nn.sigmoid(jnp.einsum("oc,ncl->nol", p["wse2"][:, :, 0], h)
                        + p["bse2"][None, :, None])
    return x + (y2 + se)


if __name__ == "__main__":
    # ReBlock(in_layer=C, out_layer=C, kernel_size=7, dilation=1, dropout=0.1)
    # (padding=3 default; 7-tap dilation-1 conv preserves length -> residual add valid)
    N, C, L = 4, 16, 64
    K, dil, P = 7, 1, 3
    C8 = C // 8

    key = jax.random.PRNGKey(0)
    ks = jax.random.split(key, 17)
    f32 = jnp.float32
    params = {
        "w1": 0.1 * jax.random.normal(ks[0], (C, C, K), f32),
        "b1": 0.1 * jax.random.normal(ks[1], (C,), f32),
        "g1": 1.0 + 0.1 * jax.random.normal(ks[2], (C,), f32),
        "be1": 0.1 * jax.random.normal(ks[3], (C,), f32),
        "m1": 0.1 * jax.random.normal(ks[4], (C,), f32),
        "v1": 1.0 + 0.1 * jax.random.uniform(ks[5], (C,), f32),
        "w2": 0.1 * jax.random.normal(ks[6], (C, C, K), f32),
        "b2": 0.1 * jax.random.normal(ks[7], (C,), f32),
        "g2": 1.0 + 0.1 * jax.random.normal(ks[8], (C,), f32),
        "be2": 0.1 * jax.random.normal(ks[9], (C,), f32),
        "m2": 0.1 * jax.random.normal(ks[10], (C,), f32),
        "v2": 1.0 + 0.1 * jax.random.uniform(ks[11], (C,), f32),
        "wse1": 0.1 * jax.random.normal(ks[12], (C8, C, 1), f32),
        "bse1": 0.1 * jax.random.normal(ks[13], (C8,), f32),
        "wse2": 0.1 * jax.random.normal(ks[14], (C, C8, 1), f32),
        "bse2": 0.1 * jax.random.normal(ks[15], (C,), f32),
    }
    x = jax.random.normal(ks[16], (N, C, L), f32)

    out = reblock_forward(x, params, kernel_size=K, dilation=dil, padding=P)
    out = jax.block_until_ready(out)

    ref = jax.block_until_ready(
        reblock_reference(x, params, kernel_size=K, dilation=dil, padding=P))
    np.testing.assert_allclose(np.asarray(out), np.asarray(ref), rtol=1e-4, atol=1e-4)

    print("KERNEL_OK")
</pallas_src>

<mosaic_0001>
module attributes {stable_mosaic.version = 11 : i64} {
  func.func @kernel(%arg0: i32, %arg1: memref<128x16xf32, #tpu.memory_space<vmem>>, %arg2: memref<2x134xf32, #tpu.memory_space<vmem>>, %arg3: memref<7x16x16xf32, #tpu.memory_space<vmem>>, %arg4: memref<1x16xf32, #tpu.memory_space<vmem>>, %arg5: memref<1x16xf32, #tpu.memory_space<vmem>>, %arg6: memref<7x16x16xf32, #tpu.memory_space<vmem>>, %arg7: memref<1x16xf32, #tpu.memory_space<vmem>>, %arg8: memref<1x16xf32, #tpu.memory_space<vmem>>, %arg9: memref<16x2xf32, #tpu.memory_space<vmem>>, %arg10: memref<1x2xf32, #tpu.memory_space<vmem>>, %arg11: memref<2x16xf32, #tpu.memory_space<vmem>>, %arg12: memref<1x16xf32, #tpu.memory_space<vmem>>, %arg13: memref<128x16xf32, #tpu.memory_space<vmem>>, %arg14: memref<140x16xf32, #tpu.memory_space<vmem>>) attributes {dimension_semantics = [#tpu.dimension_semantics<parallel>], iteration_bounds = array<i64: 2>, scalar_prefetch = 0 : i64, scratch_operands = 1 : i64, tpu.core_type = #tpu.core_type<tc>, window_params = [{transform_indices = @transform_0, window_bounds = array<i64: 128, 16>}, {pipeline_mode = #tpu.pipeline_mode<synchronous>, transform_indices = @transform_1, window_bounds = array<i64: 2, 134>}, {pipeline_mode = #tpu.pipeline_mode<synchronous>, transform_indices = @transform_2, window_bounds = array<i64: 7, 16, 16>}, {pipeline_mode = #tpu.pipeline_mode<synchronous>, transform_indices = @transform_3, window_bounds = array<i64: 1, 16>}, {pipeline_mode = #tpu.pipeline_mode<synchronous>, transform_indices = @transform_4, window_bounds = array<i64: 1, 16>}, {pipeline_mode = #tpu.pipeline_mode<synchronous>, transform_indices = @transform_5, window_bounds = array<i64: 7, 16, 16>}, {pipeline_mode = #tpu.pipeline_mode<synchronous>, transform_indices = @transform_6, window_bounds = array<i64: 1, 16>}, {pipeline_mode = #tpu.pipeline_mode<synchronous>, transform_indices = @transform_7, window_bounds = array<i64: 1, 16>}, {pipeline_mode = #tpu.pipeline_mode<synchronous>, transform_indices = @transform_8, window_bounds = array<i64: 16, 2>}, {pipeline_mode = #tpu.pipeline_mode<synchronous>, transform_indices = @transform_9, window_bounds = array<i64: 1, 2>}, {pipeline_mode = #tpu.pipeline_mode<synchronous>, transform_indices = @transform_10, window_bounds = array<i64: 2, 16>}, {pipeline_mode = #tpu.pipeline_mode<synchronous>, transform_indices = @transform_11, window_bounds = array<i64: 1, 16>}, {transform_indices = @transform_12, window_bounds = array<i64: 128, 16>}]} {
    %cst = arith.constant 0.000000e+00 : f32
    %0 = vector.broadcast %cst : f32 to vector<6x16xf32>
    %cst_0 = arith.constant 0.000000e+00 : f32
    %1 = vector.broadcast %cst_0 : f32 to vector<3x16xf32>
    %c0 = arith.constant 0 : index
    %c0_1 = arith.constant 0 : index
    %2 = vector.load %arg14[%c0, %c0_1] : memref<140x16xf32, #tpu.memory_space<vmem>>, vector<3x16xf32>
    tpu.vector_store %arg14[%c0, %c0_1], %1 {strides = array<i32>} : memref<140x16xf32, #tpu.memory_space<vmem>>, vector<3x16xf32>,
    %c67 = arith.constant 67 : index
    %c0_2 = arith.constant 0 : index
    %3 = vector.load %arg14[%c67, %c0_2] : memref<140x16xf32, #tpu.memory_space<vmem>>, vector<6x16xf32>
    tpu.vector_store %arg14[%c67, %c0_2], %0 {strides = array<i32>} : memref<140x16xf32, #tpu.memory_space<vmem>>, vector<6x16xf32>,
    %c137 = arith.constant 137 : index
    %c0_3 = arith.constant 0 : index
    %4 = vector.load %arg14[%c137, %c0_3] : memref<140x16xf32, #tpu.memory_space<vmem>>, vector<3x16xf32>
    tpu.vector_store %arg14[%c137, %c0_3], %1 {strides = array<i32>} : memref<140x16xf32, #tpu.memory_space<vmem>>, vector<3x16xf32>,
    %c0_4 = arith.constant 0 : index
    %c0_5 = arith.constant 0 : index
    %5 = vector.load %arg1[%c0_4, %c0_5] : memref<128x16xf32, #tpu.memory_space<vmem>>, vector<64x16xf32>
    %c3 = arith.constant 3 : index
    %c0_6 = arith.constant 0 : index
    %6 = vector.load %arg14[%c3, %c0_6] : memref<140x16xf32, #tpu.memory_space<vmem>>, vector<64x16xf32>
    tpu.vector_store %arg14[%c3, %c0_6], %5 {strides = array<i32>} : memref<140x16xf32, #tpu.memory_space<vmem>>, vector<64x16xf32>,
    %c64 = arith.constant 64 : index
    %c0_7 = arith.constant 0 : index
    %7 = vector.load %arg1[%c64, %c0_7] : memref<128x16xf32, #tpu.memory_space<vmem>>, vector<64x16xf32>
    %c73 = arith.constant 73 : index
    %c0_8 = arith.constant 0 : index
    %8 = vector.load %arg14[%c73, %c0_8] : memref<140x16xf32, #tpu.memory_space<vmem>>, vector<64x16xf32>
    tpu.vector_store %arg14[%c73, %c0_8], %7 {strides = array<i32>} : memref<140x16xf32, #tpu.memory_space<vmem>>, vector<64x16xf32>,
    %c0_9 = arith.constant 0 : index
    %c0_10 = arith.constant 0 : index
    %9 = vector.load %arg14[%c0_9, %c0_10] : memref<140x16xf32, #tpu.memory_space<vmem>>, vector<134x16xf32>
    %c0_11 = arith.constant 0 : index
    %c0_12 = arith.constant 0 : index
    %c0_13 = arith.constant 0 : index
    %10 = vector.load %arg3[%c0_11, %c0_12, %c0_13] : memref<7x16x16xf32, #tpu.memory_space<vmem>>, vector<1x16x16xf32>
    %11 = vector.shape_cast %10 : vector<1x16x16xf32> to vector<16x16xf32>
    %cst_14 = arith.constant dense<0.000000e+00> : vector<134x16xf32>
    %12 = tpu.matmul %9, %11, %cst_14 {dimension_numbers = #tpu.dot_dimension_numbers<[1], [0], [0], [1], [0, 0, 1, 1], [], []>} : vector<134x16xf32>, vector<16x16xf32>, vector<134x16xf32> -> vector<134x16xf32>
    %c1 = arith.constant 1 : index
    %c0_15 = arith.constant 0 : index
    %13 = vector.load %arg14[%c1, %c0_15] : memref<140x16xf32, #tpu.memory_space<vmem>>, vector<134x16xf32>
    %c1_16 = arith.constant 1 : index
    %c0_17 = arith.constant 0 : index
    %c0_18 = arith.constant 0 : index
    %14 = vector.load %arg3[%c1_16, %c0_17, %c0_18] : memref<7x16x16xf32, #tpu.memory_space<vmem>>, vector<1x16x16xf32>
    %15 = vector.shape_cast %14 : vector<1x16x16xf32> to vector<16x16xf32>
    %cst_19 = arith.constant dense<0.000000e+00> : vector<134x16xf32>
    %16 = tpu.matmul %13, %15, %cst_19 {dimension_numbers = #tpu.dot_dimension_numbers<[1], [0], [0], [1], [0, 0, 1, 1], [], []>} : vector<134x16xf32>, vector<16x16xf32>, vector<134x16xf32> -> vector<134x16xf32>
    %17 = arith.addf %12, %16 : vector<134x16xf32>
    %c2 = arith.constant 2 : index
    %c0_20 = arith.constant 0 : index
    %18 = vector.load %arg14[%c2, %c0_20] : memref<140x16xf32, #tpu.memory_space<vmem>>, vector<134x16xf32>
    %c2_21 = arith.constant 2 : index
    %c0_22 = arith.constant 0 : index
    %c0_23 = arith.constant 0 : index
    %19 = vector.load %arg3[%c2_21, %c0_22, %c0_23] : memref<7x16x16xf32, #tpu.memory_space<vmem>>, vector<1x16x16xf32>
    %20 = vector.shape_cast %19 : vector<1x16x16xf32> to vector<16x16xf32>
    %cst_24 = arith.constant dense<0.000000e+00> : vector<134x16xf32>
    %21 = tpu.matmul %18, %20, %cst_24 {dimension_numbers = #tpu.dot_dimension_numbers<[1], [0], [0], [1], [0, 0, 1, 1], [], []>} : vector<134x16xf32>, vector<16x16xf32>, vector<134x16xf32> -> vector<134x16xf32>
    %22 = arith.addf %17, %21 : vector<134x16xf32>
    %c3_25 = arith.constant 3 : index
    %c0_26 = arith.constant 0 : index
    %23 = vector.load %arg14[%c3_25, %c0_26] : memref<140x16xf32, #tpu.memory_space<vmem>>, vector<134x16xf32>
    %c3_27 = arith.constant 3 : index
    %c0_28 = arith.constant 0 : index
    %c0_29 = arith.constant 0 : index
    %24 = vector.load %arg3[%c3_27, %c0_28, %c0_29] : memref<7x16x16xf32, #tpu.memory_space<vmem>>, vector<1x16x16xf32>
    %25 = vector.shape_cast %24 : vector<1x16x16xf32> to vector<16x16xf32>
    %cst_30 = arith.constant dense<0.000000e+00> : vector<134x16xf32>
    %26 = tpu.matmul %23, %25, %cst_30 {dimension_numbers = #tpu.dot_dimension_numbers<[1], [0], [0], [1], [0, 0, 1, 1], [], []>} : vector<134x16xf32>, vector<16x16xf32>, vector<134x16xf32> -> vector<134x16xf32>
    %27 = arith.addf %22, %26 : vector<134x16xf32>
    %c4 = arith.constant 4 : index
    %c0_31 = arith.constant 0 : index
    %28 = vector.load %arg14[%c4, %c0_31] : memref<140x16xf32, #tpu.memory_space<vmem>>, vector<134x16xf32>
    %c4_32 = arith.constant 4 : index
    %c0_33 = arith.constant 0 : index
    %c0_34 = arith.constant 0 : index
    %29 = vector.load %arg3[%c4_32, %c0_33, %c0_34] : memref<7x16x16xf32, #tpu.memory_space<vmem>>, vector<1x16x16xf32>
    %30 = vector.shape_cast %29 : vector<1x16x16xf32> to vector<16x16xf32>
    %cst_35 = arith.constant dense<0.000000e+00> : vector<134x16xf32>
    %31 = tpu.matmul %28, %30, %cst_35 {dimension_numbers = #tpu.dot_dimension_numbers<[1], [0], [0], [1], [0, 0, 1, 1], [], []>} : vector<134x16xf32>, vector<16x16xf32>, vector<134x16xf32> -> vector<134x16xf32>
    %32 = arith.addf %27, %31 : vector<134x16xf32>
    %c5 = arith.constant 5 : index
    %c0_36 = arith.constant 0 : index
    %33 = vector.load %arg14[%c5, %c0_36] : memref<140x16xf32, #tpu.memory_space<vmem>>, vector<134x16xf32>
    %c5_37 = arith.constant 5 : index
    %c0_38 = arith.constant 0 : index
    %c0_39 = arith.constant 0 : index
    %34 = vector.load %arg3[%c5_37, %c0_38, %c0_39] : memref<7x16x16xf32, #tpu.memory_space<vmem>>, vector<1x16x16xf32>
    %35 = vector.shape_cast %34 : vector<1x16x16xf32> to vector<16x16xf32>
    %cst_40 = arith.constant dense<0.000000e+00> : vector<134x16xf32>
    %36 = tpu.matmul %33, %35, %cst_40 {dimension_numbers = #tpu.dot_dimension_numbers<[1], [0], [0], [1], [0, 0, 1, 1], [], []>} : vector<134x16xf32>, vector<16x16xf32>, vector<134x16xf32> -> vector<134x16xf32>
    %37 = arith.addf %32, %36 : vector<134x16xf32>
    %c6 = arith.constant 6 : index
    %c0_41 = arith.constant 0 : index
    %38 = vector.load %arg14[%c6, %c0_41] : memref<140x16xf32, #tpu.memory_space<vmem>>, vector<134x16xf32>
    %c6_42 = arith.constant 6 : index
    %c0_43 = arith.constant 0 : index
    %c0_44 = arith.constant 0 : index
    %39 = vector.load %arg3[%c6_42, %c0_43, %c0_44] : memref<7x16x16xf32, #tpu.memory_space<vmem>>, vector<1x16x16xf32>
    %40 = vector.shape_cast %39 : vector<1x16x16xf32> to vector<16x16xf32>
    %cst_45 = arith.constant dense<0.000000e+00> : vector<134x16xf32>
    %41 = tpu.matmul %38, %40, %cst_45 {dimension_numbers = #tpu.dot_dimension_numbers<[1], [0], [0], [1], [0, 0, 1, 1], [], []>} : vector<134x16xf32>, vector<16x16xf32>, vector<134x16xf32> -> vector<134x16xf32>
    %42 = arith.addf %37, %41 : vector<134x16xf32>
    %c0_46 = arith.constant 0 : index
    %c0_47 = arith.constant 0 : index
    %43 = vector.load %arg4[%c0_46, %c0_47] : memref<1x16xf32, #tpu.memory_space<vmem>>, vector<1x16xf32>
    %44 = vector.broadcast %43 : vector<1x16xf32> to vector<134x16xf32>
    %45 = arith.mulf %42, %44 : vector<134x16xf32>
    %c0_48 = arith.constant 0 : index
    %c0_49 = arith.constant 0 : index
    %46 = vector.load %arg5[%c0_48, %c0_49] : memref<1x16xf32, #tpu.memory_space<vmem>>, vector<1x16xf32>
    %47 = vector.broadcast %46 : vector<1x16xf32> to vector<134x16xf32>
    %48 = arith.addf %45, %47 : vector<134x16xf32>
    %cst_50 = arith.constant 0.000000e+00 : f32
    %49 = vector.broadcast %cst_50 : f32 to vector<134x16xf32>
    %50 = arith.maximumf %48, %49 : vector<134x16xf32>
    %c3_51 = arith.constant 3 : index
    %c0_52 = arith.constant 0 : index
    %51 = vector.load %arg14[%c3_51, %c0_52] : memref<140x16xf32, #tpu.memory_space<vmem>>, vector<134x16xf32>
    tpu.vector_store %arg14[%c3_51, %c0_52], %50 {strides = array<i32>} : memref<140x16xf32, #tpu.memory_space<vmem>>, vector<134x16xf32>,
    %c67_53 = arith.constant 67 : index
    %c0_54 = arith.constant 0 : index
    %52 = vector.load %arg14[%c67_53, %c0_54] : memref<140x16xf32, #tpu.memory_space<vmem>>, vector<6x16xf32>
    tpu.vector_store %arg14[%c67_53, %c0_54], %0 {strides = array<i32>} : memref<140x16xf32, #tpu.memory_space<vmem>>, vector<6x16xf32>,
    %c0_55 = arith.constant 0 : index
    %c0_56 = arith.constant 0 : index
    %53 = vector.load %arg14[%c0_55, %c0_56] : memref<140x16xf32, #tpu.memory_space<vmem>>, vector<134x16xf32>
    %c0_57 = arith.constant 0 : index
    %c0_58 = arith.constant 0 : index
    %c0_59 = arith.constant 0 : index
    %54 = vector.load %arg6[%c0_57, %c0_58, %c0_59] : memref<7x16x16xf32, #tpu.memory_space<vmem>>, vector<1x16x16xf32>
    %55 = vector.shape_cast %54 : vector<1x16x16xf32> to vector<16x16xf32>
    %cst_60 = arith.constant dense<0.000000e+00> : vector<134x16xf32>
    %56 = tpu.matmul %53, %55, %cst_60 {dimension_numbers = #tpu.dot_dimension_numbers<[1], [0], [0], [1], [0, 0, 1, 1], [], []>} : vector<134x16xf32>, vector<16x16xf32>, vector<134x16xf32> -> vector<134x16xf32>
    %c1_61 = arith.constant 1 : index
    %c0_62 = arith.constant 0 : index
    %57 = vector.load %arg14[%c1_61, %c0_62] : memref<140x16xf32, #tpu.memory_space<vmem>>, vector<134x16xf32>
    %c1_63 = arith.constant 1 : index
    %c0_64 = arith.constant 0 : index
    %c0_65 = arith.constant 0 : index
    %58 = vector.load %arg6[%c1_63, %c0_64, %c0_65] : memref<7x16x16xf32, #tpu.memory_space<vmem>>, vector<1x16x16xf32>
    %59 = vector.shape_cast %58 : vector<1x16x16xf32> to vector<16x16xf32>
    %cst_66 = arith.constant dense<0.000000e+00> : vector<134x16xf32>
    %60 = tpu.matmul %57, %59, %cst_66 {dimension_numbers = #tpu.dot_dimension_numbers<[1], [0], [0], [1], [0, 0, 1, 1], [], []>} : vector<134x16xf32>, vector<16x16xf32>, vector<134x16xf32> -> vector<134x16xf32>
    %61 = arith.addf %56, %60 : vector<134x16xf32>
    %c2_67 = arith.constant 2 : index
    %c0_68 = arith.constant 0 : index
    %62 = vector.load %arg14[%c2_67, %c0_68] : memref<140x16xf32, #tpu.memory_space<vmem>>, vector<134x16xf32>
    %c2_69 = arith.constant 2 : index
    %c0_70 = arith.constant 0 : index
    %c0_71 = arith.constant 0 : index
    %63 = vector.load %arg6[%c2_69, %c0_70, %c0_71] : memref<7x16x16xf32, #tpu.memory_space<vmem>>, vector<1x16x16xf32>
    %64 = vector.shape_cast %63 : vector<1x16x16xf32> to vector<16x16xf32>
    %cst_72 = arith.constant dense<0.000000e+00> : vector<134x16xf32>
    %65 = tpu.matmul %62, %64, %cst_72 {dimension_numbers = #tpu.dot_dimension_numbers<[1], [0], [0], [1], [0, 0, 1, 1], [], []>} : vector<134x16xf32>, vector<16x16xf32>, vector<134x16xf32> -> vector<134x16xf32>
    %66 = arith.addf %61, %65 : vector<134x16xf32>
    %c3_73 = arith.constant 3 : index
    %c0_74 = arith.constant 0 : index
    %67 = vector.load %arg14[%c3_73, %c0_74] : memref<140x16xf32, #tpu.memory_space<vmem>>, vector<134x16xf32>
    %c3_75 = arith.constant 3 : index
    %c0_76 = arith.constant 0 : index
    %c0_77 = arith.constant 0 : index
    %68 = vector.load %arg6[%c3_75, %c0_76, %c0_77] : memref<7x16x16xf32, #tpu.memory_space<vmem>>, vector<1x16x16xf32>
    %69 = vector.shape_cast %68 : vector<1x16x16xf32> to vector<16x16xf32>
    %cst_78 = arith.constant dense<0.000000e+00> : vector<134x16xf32>
    %70 = tpu.matmul %67, %69, %cst_78 {dimension_numbers = #tpu.dot_dimension_numbers<[1], [0], [0], [1], [0, 0, 1, 1], [], []>} : vector<134x16xf32>, vector<16x16xf32>, vector<134x16xf32> -> vector<134x16xf32>
    %71 = arith.addf %66, %70 : vector<134x16xf32>
    %c4_79 = arith.constant 4 : index
    %c0_80 = arith.constant 0 : index
    %72 = vector.load %arg14[%c4_79, %c0_80] : memref<140x16xf32, #tpu.memory_space<vmem>>, vector<134x16xf32>
    %c4_81 = arith.constant 4 : index
    %c0_82 = arith.constant 0 : index
    %c0_83 = arith.constant 0 : index
    %73 = vector.load %arg6[%c4_81, %c0_82, %c0_83] : memref<7x16x16xf32, #tpu.memory_space<vmem>>, vector<1x16x16xf32>
    %74 = vector.shape_cast %73 : vector<1x16x16xf32> to vector<16x16xf32>
    %cst_84 = arith.constant dense<0.000000e+00> : vector<134x16xf32>
    %75 = tpu.matmul %72, %74, %cst_84 {dimension_numbers = #tpu.dot_dimension_numbers<[1], [0], [0], [1], [0, 0, 1, 1], [], []>} : vector<134x16xf32>, vector<16x16xf32>, vector<134x16xf32> -> vector<134x16xf32>
    %76 = arith.addf %71, %75 : vector<134x16xf32>
    %c5_85 = arith.constant 5 : index
    %c0_86 = arith.constant 0 : index
    %77 = vector.load %arg14[%c5_85, %c0_86] : memref<140x16xf32, #tpu.memory_space<vmem>>, vector<134x16xf32>
    %c5_87 = arith.constant 5 : index
    %c0_88 = arith.constant 0 : index
    %c0_89 = arith.constant 0 : index
    %78 = vector.load %arg6[%c5_87, %c0_88, %c0_89] : memref<7x16x16xf32, #tpu.memory_space<vmem>>, vector<1x16x16xf32>
    %79 = vector.shape_cast %78 : vector<1x16x16xf32> to vector<16x16xf32>
    %cst_90 = arith.constant dense<0.000000e+00> : vector<134x16xf32>
    %80 = tpu.matmul %77, %79, %cst_90 {dimension_numbers = #tpu.dot_dimension_numbers<[1], [0], [0], [1], [0, 0, 1, 1], [], []>} : vector<134x16xf32>, vector<16x16xf32>, vector<134x16xf32> -> vector<134x16xf32>
    %81 = arith.addf %76, %80 : vector<134x16xf32>
    %c6_91 = arith.constant 6 : index
    %c0_92 = arith.constant 0 : index
    %82 = vector.load %arg14[%c6_91, %c0_92] : memref<140x16xf32, #tpu.memory_space<vmem>>, vector<134x16xf32>
    %c6_93 = arith.constant 6 : index
    %c0_94 = arith.constant 0 : index
    %c0_95 = arith.constant 0 : index
    %83 = vector.load %arg6[%c6_93, %c0_94, %c0_95] : memref<7x16x16xf32, #tpu.memory_space<vmem>>, vector<1x16x16xf32>
    %84 = vector.shape_cast %83 : vector<1x16x16xf32> to vector<16x16xf32>
    %cst_96 = arith.constant dense<0.000000e+00> : vector<134x16xf32>
    %85 = tpu.matmul %82, %84, %cst_96 {dimension_numbers = #tpu.dot_dimension_numbers<[1], [0], [0], [1], [0, 0, 1, 1], [], []>} : vector<134x16xf32>, vector<16x16xf32>, vector<134x16xf32> -> vector<134x16xf32>
    %86 = arith.addf %81, %85 : vector<134x16xf32>
    %c0_97 = arith.constant 0 : index
    %c0_98 = arith.constant 0 : index
    %87 = vector.load %arg7[%c0_97, %c0_98] : memref<1x16xf32, #tpu.memory_space<vmem>>, vector<1x16xf32>
    %88 = vector.broadcast %87 : vector<1x16xf32> to vector<134x16xf32>
    %89 = arith.mulf %86, %88 : vector<134x16xf32>
    %c0_99 = arith.constant 0 : index
    %c0_100 = arith.constant 0 : index
    %90 = vector.load %arg8[%c0_99, %c0_100] : memref<1x16xf32, #tpu.memory_space<vmem>>, vector<1x16xf32>
    %91 = vector.broadcast %90 : vector<1x16xf32> to vector<134x16xf32>
    %92 = arith.addf %89, %91 : vector<134x16xf32>
    %cst_101 = arith.constant 0.000000e+00 : f32
    %93 = vector.broadcast %cst_101 : f32 to vector<134x16xf32>
    %94 = arith.maximumf %92, %93 : vector<134x16xf32>
    %c0_102 = arith.constant 0 : index
    %c0_103 = arith.constant 0 : index
    %95 = vector.load %arg2[%c0_102, %c0_103] : memref<2x134xf32, #tpu.memory_space<vmem>>, vector<2x134xf32>
    %cst_104 = arith.constant dense<0.000000e+00> : vector<2x16xf32>
    %96 = tpu.matmul %95, %94, %cst_104 {dimension_numbers = #tpu.dot_dimension_numbers<[1], [0], [0], [1], [0, 0, 1, 1], [], []>} : vector<2x134xf32>, vector<134x16xf32>, vector<2x16xf32> -> vector<2x16xf32>
    %c0_105 = arith.constant 0 : index
    %c0_106 = arith.constant 0 : index
    %97 = vector.load %arg9[%c0_105, %c0_106] : memref<16x2xf32, #tpu.memory_space<vmem>>, vector<16x2xf32>
    %cst_107 = arith.constant dense<0.000000e+00> : vector<2x2xf32>
    %98 = tpu.matmul %96, %97, %cst_107 {dimension_numbers = #tpu.dot_dimension_numbers<[1], [0], [0], [1], [0, 0, 1, 1], [], []>} : vector<2x16xf32>, vector<16x2xf32>, vector<2x2xf32> -> vector<2x2xf32>
    %c0_108 = arith.constant 0 : index
    %c0_109 = arith.constant 0 : index
    %99 = vector.load %arg10[%c0_108, %c0_109] : memref<1x2xf32, #tpu.memory_space<vmem>>, vector<1x2xf32>
    %100 = vector.broadcast %99 : vector<1x2xf32> to vector<2x2xf32>
    %101 = arith.addf %98, %100 : vector<2x2xf32>
    %cst_110 = arith.constant 0.000000e+00 : f32
    %102 = vector.broadcast %cst_110 : f32 to vector<2x2xf32>
    %103 = arith.maximumf %101, %102 : vector<2x2xf32>
    %c0_111 = arith.constant 0 : index
    %c0_112 = arith.constant 0 : index
    %104 = vector.load %arg11[%c0_111, %c0_112] : memref<2x16xf32, #tpu.memory_space<vmem>>, vector<2x16xf32>
    %cst_113 = arith.constant dense<0.000000e+00> : vector<2x16xf32>
    %105 = tpu.matmul %103, %104, %cst_113 {dimension_numbers = #tpu.dot_dimension_numbers<[1], [0], [0], [1], [0, 0, 1, 1], [], []>} : vector<2x2xf32>, vector<2x16xf32>, vector<2x16xf32> -> vector<2x16xf32>
    %c0_114 = arith.constant 0 : index
    %c0_115 = arith.constant 0 : index
    %106 = vector.load %arg12[%c0_114, %c0_115] : memref<1x16xf32, #tpu.memory_space<vmem>>, vector<1x16xf32>
    %107 = vector.broadcast %106 : vector<1x16xf32> to vector<2x16xf32>
    %108 = arith.addf %105, %107 : vector<2x16xf32>
    %109 = arith.negf %108 : vector<2x16xf32>
    %110 = math.exp %109 : vector<2x16xf32>
    %cst_116 = arith.constant 1.000000e+00 : f32
    %111 = vector.broadcast %cst_116 : f32 to vector<2x16xf32>
    %112 = arith.addf %111, %110 : vector<2x16xf32>
    %113 = arith.divf %111, %112 : vector<2x16xf32>
    %c3_117 = arith.constant 3 : index
    %c0_118 = arith.constant 0 : index
    %114 = vector.load %arg14[%c3_117, %c0_118] : memref<140x16xf32, #tpu.memory_space<vmem>>, vector<134x16xf32>
    tpu.vector_store %arg14[%c3_117, %c0_118], %94 {strides = array<i32>} : memref<140x16xf32, #tpu.memory_space<vmem>>, vector<134x16xf32>,
    %c0_119 = arith.constant 0 : index
    %c0_120 = arith.constant 0 : index
    %115 = vector.load %arg1[%c0_119, %c0_120] : memref<128x16xf32, #tpu.memory_space<vmem>>, vector<64x16xf32>
    %c3_121 = arith.constant 3 : index
    %c0_122 = arith.constant 0 : index
    %116 = vector.load %arg14[%c3_121, %c0_122] : memref<140x16xf32, #tpu.memory_space<vmem>>, vector<64x16xf32>
    %117 = arith.addf %115, %116 : vector<64x16xf32>
    %118 = vector.extract_strided_slice %113 {offsets = [0, 0], sizes = [1, 16], strides = [1, 1]} : vector<2x16xf32> to vector<1x16xf32>
    %119 = vector.broadcast %118 : vector<1x16xf32> to vector<64x16xf32>
    %120 = arith.addf %117, %119 : vector<64x16xf32>
    %c0_123 = arith.constant 0 : index
    %c0_124 = arith.constant 0 : index
    %121 = vector.load %arg13[%c0_123, %c0_124] : memref<128x16xf32, #tpu.memory_space<vmem>>, vector<64x16xf32>
    tpu.vector_store %arg13[%c0_123, %c0_124], %120 {strides = array<i32>} : memref<128x16xf32, #tpu.memory_space<vmem>>, vector<64x16xf32>,
    %c64_125 = arith.constant 64 : index
    %c0_126 = arith.constant 0 : index
    %122 = vector.load %arg1[%c64_125, %c0_126] : memref<128x16xf32, #tpu.memory_space<vmem>>, vector<64x16xf32>
    %c73_127 = arith.constant 73 : index
    %c0_128 = arith.constant 0 : index
    %123 = vector.load %arg14[%c73_127, %c0_128] : memref<140x16xf32, #tpu.memory_space<vmem>>, vector<64x16xf32>
    %124 = arith.addf %122, %123 : vector<64x16xf32>
    %125 = vector.extract_strided_slice %113 {offsets = [1, 0], sizes = [1, 16], strides = [1, 1]} : vector<2x16xf32> to vector<1x16xf32>
    %126 = vector.broadcast %125 : vector<1x16xf32> to vector<64x16xf32>
    %127 = arith.addf %124, %126 : vector<64x16xf32>
    %c64_129 = arith.constant 64 : index
    %c0_130 = arith.constant 0 : index
    %128 = vector.load %arg13[%c64_129, %c0_130] : memref<128x16xf32, #tpu.memory_space<vmem>>, vector<64x16xf32>
    tpu.vector_store %arg13[%c64_129, %c0_130], %127 {strides = array<i32>} : memref<128x16xf32, #tpu.memory_space<vmem>>, vector<64x16xf32>,
    return
  }
  func.func @transform_0(%arg0: i32) -> (i32, i32) {
    %c0_i32 = arith.constant 0 : i32
    %c0_i32_0 = arith.constant 0 : i32
    return %arg0, %c0_i32 : i32, i32
  }
  func.func @transform_1(%arg0: i32) -> (i32, i32) {
    %c0_i32 = arith.constant 0 : i32
    %c0_i32_0 = arith.constant 0 : i32
    %c0_i32_1 = arith.constant 0 : i32
    return %c0_i32, %c0_i32_0 : i32, i32
  }
  func.func @transform_2(%arg0: i32) -> (i32, i32, i32) {
    %c0_i32 = arith.constant 0 : i32
    %c0_i32_0 = arith.constant 0 : i32
    %c0_i32_1 = arith.constant 0 : i32
    %c0_i32_2 = arith.constant 0 : i32
    return %c0_i32, %c0_i32_0, %c0_i32_1 : i32, i32, i32
  }
  func.func @transform_3(%arg0: i32) -> (i32, i32) {
    %c0_i32 = arith.constant 0 : i32
    %c0_i32_0 = arith.constant 0 : i32
    %c0_i32_1 = arith.constant 0 : i32
    return %c0_i32, %c0_i32_0 : i32, i32
  }
  func.func @transform_4(%arg0: i32) -> (i32, i32) {
    %c0_i32 = arith.constant 0 : i32
    %c0_i32_0 = arith.constant 0 : i32
    %c0_i32_1 = arith.constant 0 : i32
    return %c0_i32, %c0_i32_0 : i32, i32
  }
  func.func @transform_5(%arg0: i32) -> (i32, i32, i32) {
    %c0_i32 = arith.constant 0 : i32
    %c0_i32_0 = arith.constant 0 : i32
    %c0_i32_1 = arith.constant 0 : i32
    %c0_i32_2 = arith.constant 0 : i32
    return %c0_i32, %c0_i32_0, %c0_i32_1 : i32, i32, i32
  }
  func.func @transform_6(%arg0: i32) -> (i32, i32) {
    %c0_i32 = arith.constant 0 : i32
    %c0_i32_0 = arith.constant 0 : i32
    %c0_i32_1 = arith.constant 0 : i32
    return %c0_i32, %c0_i32_0 : i32, i32
  }
  func.func @transform_7(%arg0: i32) -> (i32, i32) {
    %c0_i32 = arith.constant 0 : i32
    %c0_i32_0 = arith.constant 0 : i32
    %c0_i32_1 = arith.constant 0 : i32
    return %c0_i32, %c0_i32_0 : i32, i32
  }
  func.func @transform_8(%arg0: i32) -> (i32, i32) {
    %c0_i32 = arith.constant 0 : i32
    %c0_i32_0 = arith.constant 0 : i32
    %c0_i32_1 = arith.constant 0 : i32
    return %c0_i32, %c0_i32_0 : i32, i32
  }
  func.func @transform_9(%arg0: i32) -> (i32, i32) {
    %c0_i32 = arith.constant 0 : i32
    %c0_i32_0 = arith.constant 0 : i32
    %c0_i32_1 = arith.constant 0 : i32
    return %c0_i32, %c0_i32_0 : i32, i32
  }
  func.func @transform_10(%arg0: i32) -> (i32, i32) {
    %c0_i32 = arith.constant 0 : i32
    %c0_i32_0 = arith.constant 0 : i32
    %c0_i32_1 = arith.constant 0 : i32
    return %c0_i32, %c0_i32_0 : i32, i32
  }
  func.func @transform_11(%arg0: i32) -> (i32, i32) {
    %c0_i32 = arith.constant 0 : i32
    %c0_i32_0 = arith.constant 0 : i32
    %c0_i32_1 = arith.constant 0 : i32
    return %c0_i32, %c0_i32_0 : i32, i32
  }
  func.func @transform_12(%arg0: i32) -> (i32, i32) {
    %c0_i32 = arith.constant 0 : i32
    %c0_i32_0 = arith.constant 0 : i32
    return %arg0, %c0_i32 : i32, i32
  }
}

</mosaic_0001>

<bundles_post_ra>
// kernel: tpu_custom_call.1
= control target key start
LH: loop header
LB: loop body
LE: loop exit
PB: predicated region body
PF: predicated region fallthrough
CT: control target
= control target key end

     0   :  { %s6196_s21 = smov 0   ;;  %s7283_s0 = inlined_call_operand.vmem [shape: f32[256,16], index: 0, kind: input, shape index: {}]   ;;  %s7284_s1 = inlined_call_operand.vmem [shape: f32[2,134], index: 1, kind: input, shape index: {}]   ;;  %s7285_s2 = inlined_call_operand.vmem [shape: f32[7,16,16], index: 2, kind: input, shape index: {}]   ;;  %s7286_s3 = inlined_call_operand.vmem [shape: f32[1,16], index: 3, kind: input, shape index: {}]   ;;  %s7287_s4 = inlined_call_operand.vmem [shape: f32[1,16], index: 4, kind: input, shape index: {}]   ;;  %s7288_s5 = inlined_call_operand.vmem [shape: f32[7,16,16], index: 5, kind: input, shape index: {}]   ;;  %s7289_s6 = inlined_call_operand.vmem [shape: f32[1,16], index: 6, kind: input, shape index: {}]   ;;  %s7290_s7 = inlined_call_operand.vmem [shape: f32[1,16], index: 7, kind: input, shape index: {}]   ;;  %s7291_s8 = inlined_call_operand.vmem [shape: f32[16,2], index: 8, kind: input, shape index: {}]   ;;  %s7292_s9 = inlined_call_operand.vmem [shape: f32[1,2], index: 9, kind: input, shape index: {}]   ;;  %s7293_s10 = inlined_call_operand.vmem [shape: f32[2,16], index: 10, kind: input, shape index: {}]   ;;  %s7294_s11 = inlined_call_operand.vmem [shape: f32[1,16], index: 11, kind: input, shape index: {}]   ;;  %s7295_s12 = inlined_call_operand.vmem [shape: f32[256,16], index: 12, kind: output, shape index: {}]  }
   0x1 LB: > { %s4289_s22 = sadd.s32 4294967295, %s6126_s21   ;;  %p4293_p0 = scmp.ge.s32.totalorder %s6126_s21, 1  ;;  %s6126_s21 = sphi %s6196_s21, %s22_s21  }
   0x2   : > { %p363_p1 = scmp.lt.s32.totalorder %s6126_s21, 3 }
   0x4   : > { %p364_p2 = pnand %p4293_p0, %p363_p1 }
   0x5   : > { %v4298_v0 = vld [vmem:[%s7285_s2 + $0x10] sm:$0xff] (!%p364_p2)  ;;  %v4299_v1 = vld [vmem:[%s7285_s2 + $0x18] sm:$0xff] (!%p364_p2)  ;;  %s4294_s27 = sshll.u32 (!%p364_p2), %s4289_s22, 4  ;;  %v6128_v2 = vmov (!%p364_p2), 0.0|0.0   ;;  %vm6129_vm0 = vmmov (!%p364_p2), 0   ;;  %v6130_v4 = vmov (!%p364_p2), 0.0  }
   0x6   : > { %367 = sbr.rel (%p364_p2) target bundleno = 2033 (0x7f1), region = 68  ;;  %5628 = vmatprep.subr.bf16.mxu0 (!%p364_p2), %v6128_v2  ;;  %v5629_v3 = vpack.c.bf16 (!%p364_p2), %v4299_v1, %v4298_v0  ;;  %4850 = vmatprep.mubr.msk.f32.mxu0 (!%p364_p2), %vm6129_vm0, %v6130_v4  ;;  %p406_p3 = scmp.lt.s32.totalorder (!%p364_p2), %s4294_s27, 31  ;;  %vm417_vm1 = vcmask (!%p364_p2), 124928   ;;  %vm419_vm2 = vcmask (!%p364_p2), 128000   ;;  %vm430_vm3 = vcmask (!%p364_p2), 130048   ;;  %v472_v8 = vld [vmem:[%s7285_s2] sm:$0xff] (!%p364_p2) }
   0x7   : > { %418 = vst.msk [vmem:[#allocation2] sm:$0x7] (!%p364_p2), %vm417_vm1, %v6130_v4  ;;  %421 = vst.msk [vmem:[#allocation2 + $0x89] sm:$0x7] (!%p364_p2), %vm417_vm1, %v6130_v4  ;;  %5649 = vmatprep.subr.bf16.mxu1 (!%p364_p2), %v6128_v2  ;;  %5235 = vmatprep.mubr.msk.f32.mxu1 (!%p364_p2), %vm6129_vm0, %v6130_v4  ;;  %v473_v9 = vld [vmem:[%s7285_s2 + $0x8] sm:$0xff] (!%p364_p2)  ;;  %v4334_v41 = vld [vmem:[%s7285_s2 + $0x20] sm:$0xff] (!%p364_p2) }
   0x8   : > { %420 = vst.msk [vmem:[#allocation2 + $0x43] sm:$0x3f] (!%p364_p2), %vm419_vm2, %v6130_v4  ;;  %5630 = vmatpush3.bf16.msra.mxu0 (!%p364_p2), %v5629_v3  ;;  %v5632_v23 = vpack.c.bf16 (!%p364_p2), %v473_v9, %v472_v8  ;;  %v4335_v42 = vld [vmem:[%s7285_s2 + $0x28] sm:$0xff] (!%p364_p2)  ;;  %v4353_v61 = vld [vmem:[%s7285_s2 + $0x30] sm:$0xff] (!%p364_p2)  ;;  %v4354_v62 = vld [vmem:[%s7285_s2 + $0x38] sm:$0xff] (!%p364_p2)  ;;  %vm3876_vm4 = vcmask (!%p364_p2), 48128  }
   0x9   : > { %5631 = vmatprep.subr.bf16.mxu0 (!%p364_p2), %v6128_v2  ;;  %v5635_v44 = vpack.c.bf16 (!%p364_p2), %v4335_v42, %v4334_v41  ;;  %v5638_v0 = vpack.c.bf16 (!%p364_p2), %v4354_v62, %v4353_v61  ;;  %vm3879_vm5 = vcmask (!%p364_p2), 1045504   ;;  %vm4048_vm6 = vcmask (!%p364_p2), 1041408  }
   0xa   : > { %vm4044_vm7 = vcmask (!%p364_p2), 15360  }
   0xd   : > { %s7297_s27 = smov (!%p406_p3, %s4294_s27), 31 }
   0xe   : > { %s4295_s28 = sshll.u32 %s7297_s27, 3 }
   0xf   : > { %s6229_s13 = scalar_lea.vmem %s7283_s0, %s4295_s28  ;;  %s7246_s17 = scalar_lea.vmem %s7295_s12, %s4295_s28 }
  0x10   : > { %v422_v5 = vld [vmem:[%s6229_s13] sm:$0xff]  ;;  %v423_v6 = vld [vmem:[%s6229_s13 + $0x8] sm:$0xff]  ;;  %v424_v7 = vld [vmem:[%s6229_s13 + $0x10] sm:$0xff] }
  0x11   : > { %431 = vst.msk [vmem:[#allocation2 + $0x3] sm:$0xff] %vm430_vm3, %v422_v5  ;;  %432 = vst.msk [vmem:[#allocation2 + $0xb] sm:$0xff] %vm430_vm3, %v423_v6  ;;  %v425_v10 = vld [vmem:[%s6229_s13 + $0x18] sm:$0xff]  ;;  %v426_v11 = vld [vmem:[%s6229_s13 + $0x20] sm:$0xff] }
  0x12   : > { %433 = vst.msk [vmem:[#allocation2 + $0x13] sm:$0xff] %vm430_vm3, %v424_v7  ;;  %v427_v12 = vld [vmem:[%s6229_s13 + $0x28] sm:$0xff]  ;;  %434 = vst.msk [vmem:[#allocation2 + $0x1b] sm:$0xff] %vm430_vm3, %v425_v10  ;;  %v428_v13 = vld [vmem:[%s6229_s13 + $0x30] sm:$0xff] }
  0x13   : > { %435 = vst.msk [vmem:[#allocation2 + $0x23] sm:$0xff] %vm430_vm3, %v426_v11  ;;  %436 = vst.msk [vmem:[#allocation2 + $0x2b] sm:$0xff] %vm430_vm3, %v427_v12  ;;  %v429_v14 = vld [vmem:[%s6229_s13 + $0x38] sm:$0xff]  ;;  %v439_v15 = vld [vmem:[%s6229_s13 + $0x40] sm:$0xff] }
  0x14   : > { %437 = vst.msk [vmem:[#allocation2 + $0x33] sm:$0xff] %vm430_vm3, %v428_v13  ;;  %438 = vst.msk [vmem:[#allocation2 + $0x3b] sm:$0xff] %vm430_vm3, %v429_v14  ;;  %v440_v16 = vld [vmem:[%s6229_s13 + $0x48] sm:$0xff]  ;;  %v441_v17 = vld [vmem:[%s6229_s13 + $0x50] sm:$0xff] }
  0x15   : > { %447 = vst.msk [vmem:[#allocation2 + $0x49] sm:$0xff] %vm430_vm3, %v439_v15  ;;  %v442_v18 = vld [vmem:[%s6229_s13 + $0x58] sm:$0xff]  ;;  %448 = vst.msk [vmem:[#allocation2 + $0x51] sm:$0xff] %vm430_vm3, %v440_v16  ;;  %v443_v19 = vld [vmem:[%s6229_s13 + $0x60] sm:$0xff] }
  0x16   : > { %449 = vst.msk [vmem:[#allocation2 + $0x59] sm:$0xff] %vm430_vm3, %v441_v17  ;;  %450 = vst.msk [vmem:[#allocation2 + $0x61] sm:$0xff] %vm430_vm3, %v442_v18  ;;  %v444_v20 = vld [vmem:[%s6229_s13 + $0x68] sm:$0xff]  ;;  %v445_v21 = vld [vmem:[%s6229_s13 + $0x70] sm:$0xff] }
  0x17   : > { %451 = vst.msk [vmem:[#allocation2 + $0x69] sm:$0xff] %vm430_vm3, %v443_v19  ;;  %452 = vst.msk [vmem:[#allocation2 + $0x71] sm:$0xff] %vm430_vm3, %v444_v20  ;;  %v446_v22 = vld [vmem:[%s6229_s13 + $0x78] sm:$0xff]  ;;  %v4372_v19 = vld [vmem:[%s7285_s2 + $0x40] sm:$0xff] }
  0x18   : > { %453 = vst.msk [vmem:[#allocation2 + $0x79] sm:$0xff] %vm430_vm3, %v445_v21  ;;  %454 = vst.msk [vmem:[#allocation2 + $0x81] sm:$0xff] %vm430_vm3, %v446_v22  ;;  %v474_v24 = vld [vmem:[#allocation2 + $0x1] sm:$0xff]  ;;  %v475_v25 = vld [vmem:[#allocation2 + $0x9] sm:$0xff] }
  0x19   : > { %4851 = vmatmul.mubr.msk.f32.vlgmr.msra.gmra.mrb[0].mxu0 %vm430_vm3, %v474_v24  ;;  %v476_v26 = vld [vmem:[#allocation2 + $0x11] sm:$0xff]  ;;  %v477_v27 = vld [vmem:[#allocation2 + $0x19] sm:$0xff]  ;;  %v456_v45 = vld [vmem:[#allocation2 + $0x8] sm:$0xff] }
  0x1a   : > { %4853 = vmatprep.mubr.msk.f32.mxu0 %vm6129_vm0, %v6130_v4  ;;  %5633 = vmatpush3.bf16.msra.mxu0 %v5632_v23  ;;  %v478_v28 = vld [vmem:[#allocation2 + $0x21] sm:$0xff]  ;;  %v479_v29 = vld [vmem:[#allocation2 + $0x29] sm:$0xff]  ;;  %v458_v47 = vld [vmem:[#allocation2 + $0x18] sm:$0xff] }
  0x1b   : > { %5634 = vmatprep.subr.bf16.mxu0 %v6128_v2  ;;  %v480_v30 = vld [vmem:[#allocation2 + $0x31] sm:$0xff]  ;;  %v481_v31 = vld [vmem:[#allocation2 + $0x39] sm:$0xff]  ;;  %v482_v32 = vld [vmem:[#allocation2 + $0x41] sm:$0xff] }
  0x1c   : > { %v483_v33 = vld [vmem:[#allocation2 + $0x49] sm:$0xff]  ;;  %v484_v34 = vld [vmem:[#allocation2 + $0x51] sm:$0xff]  ;;  %v455_v43 = vld [vmem:[#allocation2] sm:$0xff] }
  0x1d   : > { %4854 = vmatmul.mubr.msk.f32.gmra.mrb[2].mxu0 %vm430_vm3, %v475_v25  ;;  %v485_v35 = vld [vmem:[#allocation2 + $0x59] sm:$0xff]  ;;  %v486_v36 = vld [vmem:[#allocation2 + $0x61] sm:$0xff]  ;;  %v457_v46 = vld [vmem:[#allocation2 + $0x10] sm:$0xff] }
  0x1e   : > { %4856 = vmatprep.mubr.msk.f32.mxu0 %vm6129_vm0, %v6130_v4  ;;  %v487_v37 = vld [vmem:[#allocation2 + $0x69] sm:$0xff]  ;;  %v488_v38 = vld [vmem:[#allocation2 + $0x71] sm:$0xff]  ;;  %v459_v48 = vld [vmem:[#allocation2 + $0x20] sm:$0xff] }
  0x1f   : > { %v489_v39 = vld [vmem:[#allocation2 + $0x79] sm:$0xff]  ;;  %v490_v40 = vld [vmem:[#allocation2 + $0x81] sm:$0x3f]  ;;  %v460_v49 = vld [vmem:[#allocation2 + $0x28] sm:$0xff] }
  0x20   : > { %v461_v50 = vld [vmem:[#allocation2 + $0x30] sm:$0xff]  ;;  %v462_v51 = vld [vmem:[#allocation2 + $0x38] sm:$0xff]  ;;  %v463_v52 = vld [vmem:[#allocation2 + $0x40] sm:$0xff] }
  0x21   : > { %4857 = vmatmul.mubr.msk.f32.gmra.mrb[4].mxu0 %vm430_vm3, %v476_v26  ;;  %v464_v53 = vld [vmem:[#allocation2 + $0x48] sm:$0xff]  ;;  %v465_v54 = vld [vmem:[#allocation2 + $0x50] sm:$0xff]  ;;  %v466_v55 = vld [vmem:[#allocation2 + $0x58] sm:$0xff] }
  0x22   : > { %4859 = vmatprep.mubr.msk.f32.mxu0 %vm6129_vm0, %v6130_v4  ;;  %v467_v56 = vld [vmem:[#allocation2 + $0x60] sm:$0xff]  ;;  %v468_v57 = vld [vmem:[#allocation2 + $0x68] sm:$0xff]  ;;  %v469_v58 = vld [vmem:[#allocation2 + $0x70] sm:$0xff] }
  0x23   : > { %v470_v59 = vld [vmem:[#allocation2 + $0x78] sm:$0xff]  ;;  %v471_v60 = vld [vmem:[#allocation2 + $0x80] sm:$0x3f]  ;;  %v897_v1 = vld [vmem:[#allocation2 + $0xa] sm:$0xff] }
  0x24   : > { %v896_v63 = vld [vmem:[#allocation2 + $0x2] sm:$0xff]  ;;  %v898_v3 = vld [vmem:[#allocation2 + $0x12] sm:$0xff]  ;;  %v899_v5 = vld [vmem:[#allocation2 + $0x1a] sm:$0xff] }
  0x25   : > { %4860 = vmatmul.mubr.msk.f32.gmra.mrb[6].mxu0 %vm430_vm3, %v477_v27  ;;  %v900_v6 = vld [vmem:[#allocation2 + $0x22] sm:$0xff]  ;;  %v901_v7 = vld [vmem:[#allocation2 + $0x2a] sm:$0xff]  ;;  %v902_v8 = vld [vmem:[#allocation2 + $0x32] sm:$0xff] }
  0x26   : > { %4862 = vmatprep.mubr.msk.f32.mxu0 %vm6129_vm0, %v6130_v4  ;;  %v903_v9 = vld [vmem:[#allocation2 + $0x3a] sm:$0xff]  ;;  %v904_v10 = vld [vmem:[#allocation2 + $0x42] sm:$0xff]  ;;  %v905_v11 = vld [vmem:[#allocation2 + $0x4a] sm:$0xff] }
  0x27   : > { %v906_v12 = vld [vmem:[#allocation2 + $0x52] sm:$0xff]  ;;  %v907_v13 = vld [vmem:[#allocation2 + $0x5a] sm:$0xff]  ;;  %v908_v14 = vld [vmem:[#allocation2 + $0x62] sm:$0xff] }
  0x28   : > { %v909_v15 = vld [vmem:[#allocation2 + $0x6a] sm:$0xff]  ;;  %v910_v16 = vld [vmem:[#allocation2 + $0x72] sm:$0xff]  ;;  %v911_v17 = vld [vmem:[#allocation2 + $0x7a] sm:$0xff] }
  0x29   : > { %4863 = vmatmul.mubr.msk.f32.gmra.mrb[8].mxu0 %vm430_vm3, %v478_v28  ;;  %v912_v18 = vld [vmem:[#allocation2 + $0x82] sm:$0x3f]  ;;  %v4373_v20 = vld [vmem:[%s7285_s2 + $0x48] sm:$0xff]  ;;  %v1136_v24 = vld [vmem:[#allocation2 + $0x13] sm:$0xff] }
  0x2a   : > { %4865 = vmatprep.mubr.msk.f32.mxu0 %vm6129_vm0, %v6130_v4  ;;  %v1134_v21 = vld [vmem:[#allocation2 + $0x3] sm:$0xff]  ;;  %v5641_v22 = vpack.c.bf16 %v4373_v20, %v4372_v19  ;;  %v1135_v23 = vld [vmem:[#allocation2 + $0xb] sm:$0xff]  ;;  %v1137_v25 = vld [vmem:[#allocation2 + $0x1b] sm:$0xff] }
  0x2b   : > { %v1138_v26 = vld [vmem:[#allocation2 + $0x23] sm:$0xff]  ;;  %v1139_v27 = vld [vmem:[#allocation2 + $0x2b] sm:$0xff]  ;;  %v1140_v28 = vld [vmem:[#allocation2 + $0x33] sm:$0xff] }
  0x2c   : > { %v1372_v41 = vld [vmem:[#allocation2 + $0x4] sm:$0xff]  ;;  %v1850_v19 = vld [vmem:[#allocation2 + $0x16] sm:$0xff] }
  0x2d   : > { %4866 = vmatmul.mubr.msk.f32.gmra.mrb[10].mxu0 %vm430_vm3, %v479_v29  ;;  %v1141_v29 = vld [vmem:[#allocation2 + $0x3b] sm:$0xff]  ;;  %v1610_v61 = vld [vmem:[#allocation2 + $0x5] sm:$0xff] }
  0x2e   : > { %4868 = vmatprep.mubr.msk.f32.mxu0 %vm6129_vm0, %v6130_v4  ;;  %v1851_v20 = vld [vmem:[#allocation2 + $0x1e] sm:$0xff] }
  0x31   : > { %4869 = vmatmul.mubr.msk.f32.gmra.mrb[12].mxu0 %vm430_vm3, %v480_v30  ;;  %v1142_v30 = vld [vmem:[#allocation2 + $0x43] sm:$0xff] }
  0x32   : > { %4871 = vmatprep.mubr.msk.f32.mxu0 %vm6129_vm0, %v6130_v4 }
  0x35   : > { %4872 = vmatmul.mubr.msk.f32.gmra.mrb[14].mxu0 %vm430_vm3, %v481_v31  ;;  %v1143_v31 = vld [vmem:[#allocation2 + $0x4b] sm:$0xff] }
  0x36   : > { %4874 = vmatprep.mubr.msk.f32.mxu0 %vm6129_vm0, %v6130_v4 }
  0x39   : > { %4875 = vmatmul.mubr.msk.f32.gmra.mrb[16].mxu0 %vm430_vm3, %v482_v32  ;;  %v1144_v32 = vld [vmem:[#allocation2 + $0x53] sm:$0xff] }
  0x3a   : > { %4877 = vmatprep.mubr.msk.f32.mxu0 %vm6129_vm0, %v6130_v4 }
  0x3d   : > { %4878 = vmatmul.mubr.msk.f32.gmra.mrb[18].mxu0 %vm430_vm3, %v483_v33  ;;  %v1145_v33 = vld [vmem:[#allocation2 + $0x5b] sm:$0xff] }
  0x3e   : > { %4880 = vmatprep.mubr.msk.f32.mxu0 %vm6129_vm0, %v6130_v4 }
  0x41   : > { %4881 = vmatmul.mubr.msk.f32.gmra.mrb[20].mxu0 %vm430_vm3, %v484_v34  ;;  %v1146_v34 = vld [vmem:[#allocation2 + $0x63] sm:$0xff] }
  0x42   : > { %4883 = vmatprep.mubr.msk.f32.mxu0 %vm6129_vm0, %v6130_v4 }
  0x45   : > { %4884 = vmatmul.mubr.msk.f32.gmra.mrb[22].mxu0 %vm430_vm3, %v485_v35  ;;  %v1147_v35 = vld [vmem:[#allocation2 + $0x6b] sm:$0xff] }
  0x46   : > { %4886 = vmatprep.mubr.msk.f32.mxu0 %vm6129_vm0, %v6130_v4 }
  0x49   : > { %4887 = vmatmul.mubr.msk.f32.gmra.mrb[24].mxu0 %vm430_vm3, %v486_v36  ;;  %v1148_v36 = vld [vmem:[#allocation2 + $0x73] sm:$0xff] }
  0x4a   : > { %4889 = vmatprep.mubr.msk.f32.mxu0 %vm6129_vm0, %v6130_v4 }
  0x4d   : > { %4890 = vmatmul.mubr.msk.f32.gmra.mrb[26].mxu0 %vm430_vm3, %v487_v37  ;;  %v1149_v37 = vld [vmem:[#allocation2 + $0x7b] sm:$0xff] }
  0x4e   : > { %4892 = vmatprep.mubr.msk.f32.mxu0 %vm6129_vm0, %v6130_v4 }
  0x51   : > { %4893 = vmatmul.mubr.msk.f32.gmra.mrb[28].mxu0 %vm430_vm3, %v488_v38  ;;  %v1150_v38 = vld [vmem:[#allocation2 + $0x83] sm:$0x3f] }
  0x52   : > { %4895 = vmatprep.mubr.msk.f32.mxu0 %vm6129_vm0, %v6130_v4 }
  0x55   : > { %4896 = vmatmul.mubr.msk.f32.gmra.mrb[30].mxu0 %vm430_vm3, %v489_v39  ;;  %v4391_v39 = vld [vmem:[%s7285_s2 + $0x50] sm:$0xff] }
  0x56   : > { %4898 = vmatprep.mubr.msk.f32.mxu0 %vm6129_vm0, %v6130_v4 }
  0x59   : > { %4899 = vmatmul.mubr.msk.f32.gmra.mrb[32].mxu0 %vm430_vm3, %v490_v40  ;;  %v4392_v40 = vld [vmem:[%s7285_s2 + $0x58] sm:$0xff] }
  0x5a   : > { %4905 = vmatprep.mubr.msk.f32.mxu0 %vm6129_vm0, %v6130_v4  ;;  %v5644_v42 = vpack.c.bf16 %v4392_v40, %v4391_v39  ;;  %v6675_v39 = vld [vmem:[%s7287_s4] ss:$0 sm:$0xff] }
  0x5d   : > { %4906 = vmatmul.mubr.msk.f32.vlgmr.msra.gmra.mrb[0].mxu0 %vm430_vm3, %v455_v43  ;;  %v1373_v43 = vld [vmem:[#allocation2 + $0xc] sm:$0xff] }
  0x5e   : > { %4908 = vmatprep.mubr.msk.f32.mxu0 %vm6129_vm0, %v6130_v4  ;;  %5636 = vmatpush3.bf16.msra.mxu0 %v5635_v44  ;;  %v1374_v44 = vld [vmem:[#allocation2 + $0x14] sm:$0xff] }
  0x5f   : > { %5637 = vmatprep.subr.bf16.mxu0 %v6128_v2 }
  0x61   : > { %4909 = vmatmul.mubr.msk.f32.gmra.mrb[2].mxu0 %vm430_vm3, %v456_v45  ;;  %v1375_v45 = vld [vmem:[#allocation2 + $0x1c] sm:$0xff] }
  0x62   : > { %4911 = vmatprep.mubr.msk.f32.mxu0 %vm6129_vm0, %v6130_v4 }
  0x65   : > { %4912 = vmatmul.mubr.msk.f32.gmra.mrb[4].mxu0 %vm430_vm3, %v457_v46  ;;  %v1376_v46 = vld [vmem:[#allocation2 + $0x24] sm:$0xff] }
  0x66   : > { %4914 = vmatprep.mubr.msk.f32.mxu0 %vm6129_vm0, %v6130_v4 }
  0x69   : > { %4915 = vmatmul.mubr.msk.f32.gmra.mrb[6].mxu0 %vm430_vm3, %v458_v47  ;;  %v1377_v47 = vld [vmem:[#allocation2 + $0x2c] sm:$0xff] }
  0x6a   : > { %4917 = vmatprep.mubr.msk.f32.mxu0 %vm6129_vm0, %v6130_v4 }
  0x6d   : > { %4918 = vmatmul.mubr.msk.f32.gmra.mrb[8].mxu0 %vm430_vm3, %v459_v48  ;;  %v1378_v48 = vld [vmem:[#allocation2 + $0x34] sm:$0xff] }
  0x6e   : > { %4920 = vmatprep.mubr.msk.f32.mxu0 %vm6129_vm0, %v6130_v4 }
  0x71   : > { %4921 = vmatmul.mubr.msk.f32.gmra.mrb[10].mxu0 %vm430_vm3, %v460_v49  ;;  %v1379_v49 = vld [vmem:[#allocation2 + $0x3c] sm:$0xff] }
  0x72   : > { %4923 = vmatprep.mubr.msk.f32.mxu0 %vm6129_vm0, %v6130_v4 }
  0x75   : > { %4924 = vmatmul.mubr.msk.f32.gmra.mrb[12].mxu0 %vm430_vm3, %v461_v50  ;;  %v1380_v50 = vld [vmem:[#allocation2 + $0x44] sm:$0xff] }
  0x76   : > { %4926 = vmatprep.mubr.msk.f32.mxu0 %vm6129_vm0, %v6130_v4 }
  0x79   : > { %4927 = vmatmul.mubr.msk.f32.gmra.mrb[14].mxu0 %vm430_vm3, %v462_v51  ;;  %v1381_v51 = vld [vmem:[#allocation2 + $0x4c] sm:$0xff] }
  0x7a   : > { %4929 = vmatprep.mubr.msk.f32.mxu0 %vm6129_vm0, %v6130_v4 }
  0x7d   : > { %4930 = vmatmul.mubr.msk.f32.gmra.mrb[16].mxu0 %vm430_vm3, %v463_v52  ;;  %v1382_v52 = vld [vmem:[#allocation2 + $0x54] sm:$0xff] }
  0x7e   : > { %4932 = vmatprep.mubr.msk.f32.mxu0 %vm6129_vm0, %v6130_v4 }
  0x81   : > { %4933 = vmatmul.mubr.msk.f32.gmra.mrb[18].mxu0 %vm430_vm3, %v464_v53  ;;  %v1383_v53 = vld [vmem:[#allocation2 + $0x5c] sm:$0xff] }
  0x82   : > { %4935 = vmatprep.mubr.msk.f32.mxu0 %vm6129_vm0, %v6130_v4 }
  0x85   : > { %4936 = vmatmul.mubr.msk.f32.gmra.mrb[20].mxu0 %vm430_vm3, %v465_v54  ;;  %v1384_v54 = vld [vmem:[#allocation2 + $0x64] sm:$0xff] }
  0x86   : > { %4938 = vmatprep.mubr.msk.f32.mxu0 %vm6129_vm0, %v6130_v4 }
  0x89   : > { %4939 = vmatmul.mubr.msk.f32.gmra.mrb[22].mxu0 %vm430_vm3, %v466_v55  ;;  %v1385_v55 = vld [vmem:[#allocation2 + $0x6c] sm:$0xff] }
  0x8a   : > { %4941 = vmatprep.mubr.msk.f32.mxu0 %vm6129_vm0, %v6130_v4 }
  0x8d   : > { %4942 = vmatmul.mubr.msk.f32.gmra.mrb[24].mxu0 %vm430_vm3, %v467_v56  ;;  %v1386_v56 = vld [vmem:[#allocation2 + $0x74] sm:$0xff] }
  0x8e   : > { %4944 = vmatprep.mubr.msk.f32.mxu0 %vm6129_vm0, %v6130_v4 }
  0x91   : > { %4945 = vmatmul.mubr.msk.f32.gmra.mrb[26].mxu0 %vm430_vm3, %v468_v57  ;;  %v1387_v57 = vld [vmem:[#allocation2 + $0x7c] sm:$0xff] }
  0x92   : > { %4947 = vmatprep.mubr.msk.f32.mxu0 %vm6129_vm0, %v6130_v4 }
  0x95   : > { %4948 = vmatmul.mubr.msk.f32.gmra.mrb[28].mxu0 %vm430_vm3, %v469_v58  ;;  %v1388_v58 = vld [vmem:[#allocation2 + $0x84] sm:$0x3f] }
  0x96   : > { %4950 = vmatprep.mubr.msk.f32.mxu0 %vm6129_vm0, %v6130_v4 }
  0x99   : > { %4951 = vmatmul.mubr.msk.f32.gmra.mrb[30].mxu0 %vm430_vm3, %v470_v59  ;;  %v4410_v59 = vld [vmem:[%s7285_s2 + $0x60] sm:$0xff] }
  0x9a   : > { %4953 = vmatprep.mubr.msk.f32.mxu0 %vm6129_vm0, %v6130_v4 }
  0x9d   : > { %4954 = vmatmul.mubr.msk.f32.gmra.mrb[32].mxu0 %vm430_vm3, %v471_v60  ;;  %v4411_v60 = vld [vmem:[%s7285_s2 + $0x68] sm:$0xff] }
  0x9e   : > { %4960 = vmatprep.mubr.msk.f32.mxu0 %vm6129_vm0, %v6130_v4  ;;  %v5647_v62 = vpack.c.bf16 %v4411_v60, %v4410_v59 }
  0xa1   : > { %4961 = vmatmul.mubr.msk.f32.vlgmr.msra.gmra.mrb[0].mxu0 %vm430_vm3, %v896_v63  ;;  %v1611_v63 = vld [vmem:[#allocation2 + $0xd] sm:$0xff] }
  0xa2   : > { %4963 = vmatprep.mubr.msk.f32.mxu0 %vm6129_vm0, %v6130_v4  ;;  %5639 = vmatpush3.bf16.msra.mxu0 %v5638_v0  ;;  %v1612_v0 = vld [vmem:[#allocation2 + $0x15] sm:$0xff] }
  0xa3   : > { %5640 = vmatprep.subr.bf16.mxu0 %v6128_v2 }
  0xa5   : > { %4964 = vmatmul.mubr.msk.f32.gmra.mrb[2].mxu0 %vm430_vm3, %v897_v1  ;;  %v1613_v1 = vld [vmem:[#allocation2 + $0x1d] sm:$0xff] }
  0xa6   : > { %4966 = vmatprep.mubr.msk.f32.mxu0 %vm6129_vm0, %v6130_v4 }
  0xa9   : > { %4967 = vmatmul.mubr.msk.f32.gmra.mrb[4].mxu0 %vm430_vm3, %v898_v3  ;;  %v1614_v3 = vld [vmem:[#allocation2 + $0x25] sm:$0xff] }
  0xaa   : > { %4969 = vmatprep.mubr.msk.f32.mxu0 %vm6129_vm0, %v6130_v4 }
  0xad   : > { %4970 = vmatmul.mubr.msk.f32.gmra.mrb[6].mxu0 %vm430_vm3, %v899_v5  ;;  %v1615_v5 = vld [vmem:[#allocation2 + $0x2d] sm:$0xff] }
  0xae   : > { %4972 = vmatprep.mubr.msk.f32.mxu0 %vm6129_vm0, %v6130_v4 }
  0xb1   : > { %4973 = vmatmul.mubr.msk.f32.gmra.mrb[8].mxu0 %vm430_vm3, %v900_v6  ;;  %v1616_v6 = vld [vmem:[#allocation2 + $0x35] sm:$0xff] }
  0xb2   : > { %4975 = vmatprep.mubr.msk.f32.mxu0 %vm6129_vm0, %v6130_v4 }
  0xb5   : > { %4976 = vmatmul.mubr.msk.f32.gmra.mrb[10].mxu0 %vm430_vm3, %v901_v7  ;;  %v1617_v7 = vld [vmem:[#allocation2 + $0x3d] sm:$0xff] }
  0xb6   : > { %4978 = vmatprep.mubr.msk.f32.mxu0 %vm6129_vm0, %v6130_v4 }
  0xb9   : > { %4979 = vmatmul.mubr.msk.f32.gmra.mrb[12].mxu0 %vm430_vm3, %v902_v8  ;;  %v1618_v8 = vld [vmem:[#allocation2 + $0x45] sm:$0xff] }
  0xba   : > { %4981 = vmatprep.mubr.msk.f32.mxu0 %vm6129_vm0, %v6130_v4 }
  0xbd   : > { %4982 = vmatmul.mubr.msk.f32.gmra.mrb[14].mxu0 %vm430_vm3, %v903_v9  ;;  %v1619_v9 = vld [vmem:[#allocation2 + $0x4d] sm:$0xff] }
  0xbe   : > { %4984 = vmatprep.mubr.msk.f32.mxu0 %vm6129_vm0, %v6130_v4 }
  0xc1   : > { %4985 = vmatmul.mubr.msk.f32.gmra.mrb[16].mxu0 %vm430_vm3, %v904_v10  ;;  %v1620_v10 = vld [vmem:[#allocation2 + $0x55] sm:$0xff] }
  0xc2   : > { %4987 = vmatprep.mubr.msk.f32.mxu0 %vm6129_vm0, %v6130_v4 }
  0xc5   : > { %4988 = vmatmul.mubr.msk.f32.gmra.mrb[18].mxu0 %vm430_vm3, %v905_v11  ;;  %v1621_v11 = vld [vmem:[#allocation2 + $0x5d] sm:$0xff] }
  0xc6   : > { %4990 = vmatprep.mubr.msk.f32.mxu0 %vm6129_vm0, %v6130_v4 }
  0xc9   : > { %4991 = vmatmul.mubr.msk.f32.gmra.mrb[20].mxu0 %vm430_vm3, %v906_v12  ;;  %v1622_v12 = vld [vmem:[#allocation2 + $0x65] sm:$0xff] }
  0xca   : > { %4993 = vmatprep.mubr.msk.f32.mxu0 %vm6129_vm0, %v6130_v4 }
  0xcd   : > { %4994 = vmatmul.mubr.msk.f32.gmra.mrb[22].mxu0 %vm430_vm3, %v907_v13  ;;  %v1623_v13 = vld [vmem:[#allocation2 + $0x6d] sm:$0xff] }
  0xce   : > { %4996 = vmatprep.mubr.msk.f32.mxu0 %vm6129_vm0, %v6130_v4 }
  0xd1   : > { %4997 = vmatmul.mubr.msk.f32.gmra.mrb[24].mxu0 %vm430_vm3, %v908_v14  ;;  %v1624_v14 = vld [vmem:[#allocation2 + $0x75] sm:$0xff] }
  0xd2   : > { %4999 = vmatprep.mubr.msk.f32.mxu0 %vm6129_vm0, %v6130_v4 }
  0xd5   : > { %5000 = vmatmul.mubr.msk.f32.gmra.mrb[26].mxu0 %vm430_vm3, %v909_v15  ;;  %v1625_v15 = vld [vmem:[#allocation2 + $0x7d] sm:$0xff] }
  0xd6   : > { %5002 = vmatprep.mubr.msk.f32.mxu0 %vm6129_vm0, %v6130_v4 }
  0xd9   : > { %5003 = vmatmul.mubr.msk.f32.gmra.mrb[28].mxu0 %vm430_vm3, %v910_v16  ;;  %v1626_v16 = vld [vmem:[#allocation2 + $0x85] sm:$0x3f] }
  0xda   : > { %5005 = vmatprep.mubr.msk.f32.mxu0 %vm6129_vm0, %v6130_v4 }
  0xdd   : > { %5006 = vmatmul.mubr.msk.f32.gmra.mrb[30].mxu0 %vm430_vm3, %v911_v17  ;;  %v1848_v17 = vld [vmem:[#allocation2 + $0x6] sm:$0xff] }
  0xde   : > { %5008 = vmatprep.mubr.msk.f32.mxu0 %vm6129_vm0, %v6130_v4 }
  0xe1   : > { %5009 = vmatmul.mubr.msk.f32.gmra.mrb[32].mxu0 %vm430_vm3, %v912_v18  ;;  %v1849_v18 = vld [vmem:[#allocation2 + $0xe] sm:$0xff] }
  0xe2   : > { %5015 = vmatprep.mubr.msk.f32.mxu0 %vm6129_vm0, %v6130_v4 }
  0xe5   : > { %5016 = vmatmul.mubr.msk.f32.vlgmr.msra.gmra.mrb[0].mxu0 %vm430_vm3, %v1134_v21  ;;  %v1852_v21 = vld [vmem:[#allocation2 + $0x26] sm:$0xff] }
  0xe6   : > { %5018 = vmatprep.mubr.msk.f32.mxu0 %vm6129_vm0, %v6130_v4  ;;  %5642 = vmatpush3.bf16.msra.mxu0 %v5641_v22  ;;  %v1853_v22 = vld [vmem:[#allocation2 + $0x2e] sm:$0xff] }
  0xe7   : > { %5643 = vmatprep.subr.bf16.mxu0 %v6128_v2 }
  0xe9   : > { %5019 = vmatmul.mubr.msk.f32.gmra.mrb[2].mxu0 %vm430_vm3, %v1135_v23  ;;  %v1854_v23 = vld [vmem:[#allocation2 + $0x36] sm:$0xff] }
  0xea   : > { %5021 = vmatprep.mubr.msk.f32.mxu0 %vm6129_vm0, %v6130_v4 }
  0xed   : > { %5022 = vmatmul.mubr.msk.f32.gmra.mrb[4].mxu0 %vm430_vm3, %v1136_v24  ;;  %v1855_v24 = vld [vmem:[#allocation2 + $0x3e] sm:$0xff] }
  0xee   : > { %5024 = vmatprep.mubr.msk.f32.mxu0 %vm6129_vm0, %v6130_v4 }
  0xf1   : > { %5025 = vmatmul.mubr.msk.f32.gmra.mrb[6].mxu0 %vm430_vm3, %v1137_v25  ;;  %v1856_v25 = vld [vmem:[#allocation2 + $0x46] sm:$0xff] }
  0xf2   : > { %5027 = vmatprep.mubr.msk.f32.mxu0 %vm6129_vm0, %v6130_v4 }
  0xf5   : > { %5028 = vmatmul.mubr.msk.f32.gmra.mrb[8].mxu0 %vm430_vm3, %v1138_v26  ;;  %v1857_v26 = vld [vmem:[#allocation2 + $0x4e] sm:$0xff] }
  0xf6   : > { %5030 = vmatprep.mubr.msk.f32.mxu0 %vm6129_vm0, %v6130_v4 }
  0xf9   : > { %5031 = vmatmul.mubr.msk.f32.gmra.mrb[10].mxu0 %vm430_vm3, %v1139_v27  ;;  %v1858_v27 = vld [vmem:[#allocation2 + $0x56] sm:$0xff] }
  0xfa   : > { %5033 = vmatprep.mubr.msk.f32.mxu0 %vm6129_vm0, %v6130_v4 }
  0xfd   : > { %5034 = vmatmul.mubr.msk.f32.gmra.mrb[12].mxu0 %vm430_vm3, %v1140_v28  ;;  %v1859_v28 = vld [vmem:[#allocation2 + $0x5e] sm:$0xff] }
  0xfe   : > { %5036 = vmatprep.mubr.msk.f32.mxu0 %vm6129_vm0, %v6130_v4 }
 0x101   : > { %5037 = vmatmul.mubr.msk.f32.gmra.mrb[14].mxu0 %vm430_vm3, %v1141_v29  ;;  %v1860_v29 = vld [vmem:[#allocation2 + $0x66] sm:$0xff] }
 0x102   : > { %5039 = vmatprep.mubr.msk.f32.mxu0 %vm6129_vm0, %v6130_v4 }
 0x105   : > { %5040 = vmatmul.mubr.msk.f32.gmra.mrb[16].mxu0 %vm430_vm3, %v1142_v30  ;;  %v1861_v30 = vld [vmem:[#allocation2 + $0x6e] sm:$0xff] }
 0x106   : > { %5042 = vmatprep.mubr.msk.f32.mxu0 %vm6129_vm0, %v6130_v4 }
 0x109   : > { %5043 = vmatmul.mubr.msk.f32.gmra.mrb[18].mxu0 %vm430_vm3, %v1143_v31  ;;  %v1862_v31 = vld [vmem:[#allocation2 + $0x76] sm:$0xff] }
 0x10a   : > { %5045 = vmatprep.mubr.msk.f32.mxu0 %vm6129_vm0, %v6130_v4 }
 0x10d   : > { %5046 = vmatmul.mubr.msk.f32.gmra.mrb[20].mxu0 %vm430_vm3, %v1144_v32  ;;  %v1863_v32 = vld [vmem:[#allocation2 + $0x7e] sm:$0xff] }
 0x10e   : > { %5048 = vmatprep.mubr.msk.f32.mxu0 %vm6129_vm0, %v6130_v4 }
 0x111   : > { %5049 = vmatmul.mubr.msk.f32.gmra.mrb[22].mxu0 %vm430_vm3, %v1145_v33  ;;  %v1864_v33 = vld [vmem:[#allocation2 + $0x86] sm:$0x3f] }
 0x112   : > { %5051 = vmatprep.mubr.msk.f32.mxu0 %vm6129_vm0, %v6130_v4 }
 0x115   : > { %5052 = vmatmul.mubr.msk.f32.gmra.mrb[24].mxu0 %vm430_vm3, %v1146_v34  ;;  %v4431_v34 = vld [vmem:[%s7288_s5 + $0x10] sm:$0xff] }
 0x116   : > { %5054 = vmatprep.mubr.msk.f32.mxu0 %vm6129_vm0, %v6130_v4 }
 0x119   : > { %5055 = vmatmul.mubr.msk.f32.gmra.mrb[26].mxu0 %vm430_vm3, %v1147_v35  ;;  %v4432_v35 = vld [vmem:[%s7288_s5 + $0x18] sm:$0xff] }
 0x11a   : > { %5057 = vmatprep.mubr.msk.f32.mxu0 %vm6129_vm0, %v6130_v4 }
 0x11d   : > { %5058 = vmatmul.mubr.msk.f32.gmra.mrb[28].mxu0 %vm430_vm3, %v1148_v36  ;;  %v5650_v36 = vpack.c.bf16 %v4432_v35, %v4431_v34 }
 0x11e   : > { %5060 = vmatprep.mubr.msk.f32.mxu0 %vm6129_vm0, %v6130_v4 }
 0x11f   : > { %5651 = vmatpush3.bf16.msra.mxu1 %v5650_v36 }
 0x120   : > { %5652 = vmatprep.subr.bf16.mxu1 %v6128_v2 }
 0x121   : > { %5061 = vmatmul.mubr.msk.f32.gmra.mrb[30].mxu0 %vm430_vm3, %v1149_v37  ;;  %v6670_v37 = vld [vmem:[%s7286_s3] ss:$0 sm:$0xff] }
 0x122   : > { %5063 = vmatprep.mubr.msk.f32.mxu0 %vm6129_vm0, %v6130_v4 }
 0x125   : > { %5064 = vmatmul.mubr.msk.f32.gmra.mrb[32].mxu0 %vm430_vm3, %v1150_v38 }
 0x126   : > { %5070 = vmatprep.mubr.msk.f32.mxu0 %vm6129_vm0, %v6130_v4 }
 0x129   : > { %5071 = vmatmul.mubr.msk.f32.vlgmr.msra.gmra.mrb[0].mxu0 %vm430_vm3, %v1372_v41 }
 0x12a   : > { %5073 = vmatprep.mubr.msk.f32.mxu0 %vm6129_vm0, %v6130_v4  ;;  %5645 = vmatpush3.bf16.msra.mxu0 %v5644_v42 }
 0x12b   : > { %5646 = vmatprep.subr.bf16.mxu0 %v6128_v2 }
 0x12d   : > { %5074 = vmatmul.mubr.msk.f32.gmra.mrb[2].mxu0 %vm430_vm3, %v1373_v43 }
 0x12e   : > { %5076 = vmatprep.mubr.msk.f32.mxu0 %vm6129_vm0, %v6130_v4 }
 0x131   : > { %5077 = vmatmul.mubr.msk.f32.gmra.mrb[4].mxu0 %vm430_vm3, %v1374_v44 }
 0x132   : > { %5079 = vmatprep.mubr.msk.f32.mxu0 %vm6129_vm0, %v6130_v4 }
 0x135   : > { %5080 = vmatmul.mubr.msk.f32.gmra.mrb[6].mxu0 %vm430_vm3, %v1375_v45 }
 0x136   : > { %5082 = vmatprep.mubr.msk.f32.mxu0 %vm6129_vm0, %v6130_v4 }
 0x139   : > { %5083 = vmatmul.mubr.msk.f32.gmra.mrb[8].mxu0 %vm430_vm3, %v1376_v46 }
 0x13a   : > { %5085 = vmatprep.mubr.msk.f32.mxu0 %vm6129_vm0, %v6130_v4 }
 0x13d   : > { %5086 = vmatmul.mubr.msk.f32.gmra.mrb[10].mxu0 %vm430_vm3, %v1377_v47 }
 0x13e   : > { %5088 = vmatprep.mubr.msk.f32.mxu0 %vm6129_vm0, %v6130_v4 }
 0x141   : > { %5089 = vmatmul.mubr.msk.f32.gmra.mrb[12].mxu0 %vm430_vm3, %v1378_v48 }
 0x142   : > { %5091 = vmatprep.mubr.msk.f32.mxu0 %vm6129_vm0, %v6130_v4 }
 0x145   : > { %5092 = vmatmul.mubr.msk.f32.gmra.mrb[14].mxu0 %vm430_vm3, %v1379_v49 }
 0x146   : > { %5094 = vmatprep.mubr.msk.f32.mxu0 %vm6129_vm0, %v6130_v4 }
 0x149   : > { %5095 = vmatmul.mubr.msk.f32.gmra.mrb[16].mxu0 %vm430_vm3, %v1380_v50 }
 0x14a   : > { %5097 = vmatprep.mubr.msk.f32.mxu0 %vm6129_vm0, %v6130_v4 }
 0x14d   : > { %5098 = vmatmul.mubr.msk.f32.gmra.mrb[18].mxu0 %vm430_vm3, %v1381_v51 }
 0x14e   : > { %5100 = vmatprep.mubr.msk.f32.mxu0 %vm6129_vm0, %v6130_v4 }
 0x151   : > { %5101 = vmatmul.mubr.msk.f32.gmra.mrb[20].mxu0 %vm430_vm3, %v1382_v52  ;;  %v2186_v52 = vld [vmem:[%s7288_s5] sm:$0xff] }
 0x152   : > { %5103 = vmatprep.mubr.msk.f32.mxu0 %vm6129_vm0, %v6130_v4 }
 0x155   : > { %5104 = vmatmul.mubr.msk.f32.gmra.mrb[22].mxu0 %vm430_vm3, %v1383_v53  ;;  %v2187_v53 = vld [vmem:[%s7288_s5 + $0x8] sm:$0xff] }
 0x156   : > { %5106 = vmatprep.mubr.msk.f32.mxu0 %vm6129_vm0, %v6130_v4 }
 0x159   : > { %5107 = vmatmul.mubr.msk.f32.gmra.mrb[24].mxu0 %vm430_vm3, %v1384_v54 }
 0x15a   : > { %5109 = vmatprep.mubr.msk.f32.mxu0 %vm6129_vm0, %v6130_v4 }
 0x15d   : > { %5110 = vmatmul.mubr.msk.f32.gmra.mrb[26].mxu0 %vm430_vm3, %v1385_v55 }
 0x15e   : > { %5112 = vmatprep.mubr.msk.f32.mxu0 %vm6129_vm0, %v6130_v4 }
 0x161   : > { %5113 = vmatmul.mubr.msk.f32.gmra.mrb[28].mxu0 %vm430_vm3, %v1386_v56  ;;  %v5653_v56 = vpack.c.bf16 %v2187_v53, %v2186_v52 }
 0x162   : > { %5115 = vmatprep.mubr.msk.f32.mxu0 %vm6129_vm0, %v6130_v4 }
 0x165   : > { %5116 = vmatmul.mubr.msk.f32.gmra.mrb[30].mxu0 %vm430_vm3, %v1387_v57 }
 0x166   : > { %5118 = vmatprep.mubr.msk.f32.mxu0 %vm6129_vm0, %v6130_v4 }
 0x169   : > { %5119 = vmatmul.mubr.msk.f32.gmra.mrb[32].mxu0 %vm430_vm3, %v1388_v58 }
 0x16a   : > { %5125 = vmatprep.mubr.msk.f32.mxu0 %vm6129_vm0, %v6130_v4 }
 0x16d   : > { %5126 = vmatmul.mubr.msk.f32.vlgmr.msra.gmra.mrb[0].mxu0 %vm430_vm3, %v1610_v61 }
 0x16e   : > { %5128 = vmatprep.mubr.msk.f32.mxu0 %vm6129_vm0, %v6130_v4  ;;  %5648 = vmatpush3.bf16.msra.mxu0 %v5647_v62 }
 0x16f   : > { %5670 = vmatprep.subr.bf16.mxu0 %v6128_v2 }
 0x171   : > { %5129 = vmatmul.mubr.msk.f32.gmra.mrb[2].mxu0 %vm430_vm3, %v1611_v63 }
 0x172   : > { %5131 = vmatprep.mubr.msk.f32.mxu0 %vm6129_vm0, %v6130_v4 }
 0x175   : > { %5132 = vmatmul.mubr.msk.f32.gmra.mrb[4].mxu0 %vm430_vm3, %v1612_v0 }
 0x176   : > { %5134 = vmatprep.mubr.msk.f32.mxu0 %vm6129_vm0, %v6130_v4 }
 0x179   : > { %5135 = vmatmul.mubr.msk.f32.gmra.mrb[6].mxu0 %vm430_vm3, %v1613_v1 }
 0x17a   : > { %5137 = vmatprep.mubr.msk.f32.mxu0 %vm6129_vm0, %v6130_v4 }
 0x17d   : > { %5138 = vmatmul.mubr.msk.f32.gmra.mrb[8].mxu0 %vm430_vm3, %v1614_v3 }
 0x17e   : > { %5140 = vmatprep.mubr.msk.f32.mxu0 %vm6129_vm0, %v6130_v4 }
 0x181   : > { %5141 = vmatmul.mubr.msk.f32.gmra.mrb[10].mxu0 %vm430_vm3, %v1615_v5 }
 0x182   : > { %5143 = vmatprep.mubr.msk.f32.mxu0 %vm6129_vm0, %v6130_v4 }
 0x185   : > { %5144 = vmatmul.mubr.msk.f32.gmra.mrb[12].mxu0 %vm430_vm3, %v1616_v6 }
 0x186   : > { %5146 = vmatprep.mubr.msk.f32.mxu0 %vm6129_vm0, %v6130_v4 }
 0x189   : > { %5147 = vmatmul.mubr.msk.f32.gmra.mrb[14].mxu0 %vm430_vm3, %v1617_v7 }
 0x18a   : > { %5149 = vmatprep.mubr.msk.f32.mxu0 %vm6129_vm0, %v6130_v4 }
 0x18d   : > { %5150 = vmatmul.mubr.msk.f32.gmra.mrb[16].mxu0 %vm430_vm3, %v1618_v8 }
 0x18e   : > { %5152 = vmatprep.mubr.msk.f32.mxu0 %vm6129_vm0, %v6130_v4 }
 0x191   : > { %5153 = vmatmul.mubr.msk.f32.gmra.mrb[18].mxu0 %vm430_vm3, %v1619_v9 }
 0x192   : > { %5155 = vmatprep.mubr.msk.f32.mxu0 %vm6129_vm0, %v6130_v4 }
 0x195   : > { %5156 = vmatmul.mubr.msk.f32.gmra.mrb[20].mxu0 %vm430_vm3, %v1620_v10 }
 0x196   : > { %5158 = vmatprep.mubr.msk.f32.mxu0 %vm6129_vm0, %v6130_v4 }
 0x199   : > { %5159 = vmatmul.mubr.msk.f32.gmra.mrb[22].mxu0 %vm430_vm3, %v1621_v11 }
 0x19a   : > { %5161 = vmatprep.mubr.msk.f32.mxu0 %vm6129_vm0, %v6130_v4 }
 0x19d   : > { %5162 = vmatmul.mubr.msk.f32.gmra.mrb[24].mxu0 %vm430_vm3, %v1622_v12 }
 0x19e   : > { %5164 = vmatprep.mubr.msk.f32.mxu0 %vm6129_vm0, %v6130_v4 }
 0x1a1   : > { %5165 = vmatmul.mubr.msk.f32.gmra.mrb[26].mxu0 %vm430_vm3, %v1623_v13 }
 0x1a2   : > { %5167 = vmatprep.mubr.msk.f32.mxu0 %vm6129_vm0, %v6130_v4 }
 0x1a5   : > { %5168 = vmatmul.mubr.msk.f32.gmra.mrb[28].mxu0 %vm430_vm3, %v1624_v14 }
 0x1a6   : > { %5170 = vmatprep.mubr.msk.f32.mxu0 %vm6129_vm0, %v6130_v4 }
 0x1a9   : > { %5171 = vmatmul.mubr.msk.f32.gmra.mrb[30].mxu0 %vm430_vm3, %v1625_v15 }
 0x1aa   : > { %5173 = vmatprep.mubr.msk.f32.mxu0 %vm6129_vm0, %v6130_v4 }
 0x1ad   : > { %5174 = vmatmul.mubr.msk.f32.gmra.mrb[32].mxu0 %vm430_vm3, %v1626_v16 }
 0x1ae   : > { %5180 = vmatprep.mubr.msk.f32.mxu0 %vm6129_vm0, %v6130_v4 }
 0x1b1   : > { %5181 = vmatmul.mubr.msk.f32.vlgmr.msra.gmra.mrb[0].mxu0 %vm430_vm3, %v1848_v17 }
 0x1b2   : > { %5183 = vmatprep.mubr.msk.f32.mxu0 %vm6129_vm0, %v6130_v4 }
 0x1b5   : > { %5184 = vmatmul.mubr.msk.f32.gmra.mrb[2].mxu0 %vm430_vm3, %v1849_v18 }
 0x1b6   : > { %5186 = vmatprep.mubr.msk.f32.mxu0 %vm6129_vm0, %v6130_v4 }
 0x1b9   : > { %5187 = vmatmul.mubr.msk.f32.gmra.mrb[4].mxu0 %vm430_vm3, %v1850_v19 }
 0x1ba   : > { %5189 = vmatprep.mubr.msk.f32.mxu0 %vm6129_vm0, %v6130_v4 }
 0x1bd   : > { %5190 = vmatmul.mubr.msk.f32.gmra.mrb[6].mxu0 %vm430_vm3, %v1851_v20 }
 0x1be   : > { %5192 = vmatprep.mubr.msk.f32.mxu0 %vm6129_vm0, %v6130_v4 }
 0x1c1   : > { %5193 = vmatmul.mubr.msk.f32.gmra.mrb[8].mxu0 %vm430_vm3, %v1852_v21 }
 0x1c2   : > { %5195 = vmatprep.mubr.msk.f32.mxu0 %vm6129_vm0, %v6130_v4 }
 0x1c5   : > { %5196 = vmatmul.mubr.msk.f32.gmra.mrb[10].mxu0 %vm430_vm3, %v1853_v22 }
 0x1c6   : > { %5198 = vmatprep.mubr.msk.f32.mxu0 %vm6129_vm0, %v6130_v4 }
 0x1c9   : > { %5199 = vmatmul.mubr.msk.f32.gmra.mrb[12].mxu0 %vm430_vm3, %v1854_v23 }
 0x1ca   : > { %5201 = vmatprep.mubr.msk.f32.mxu0 %vm6129_vm0, %v6130_v4 }
 0x1cd   : > { %5202 = vmatmul.mubr.msk.f32.gmra.mrb[14].mxu0 %vm430_vm3, %v1855_v24 }
 0x1ce   : > { %5204 = vmatprep.mubr.msk.f32.mxu0 %vm6129_vm0, %v6130_v4 }
 0x1d1   : > { %5205 = vmatmul.mubr.msk.f32.gmra.mrb[16].mxu0 %vm430_vm3, %v1856_v25 }
 0x1d2   : > { %5207 = vmatprep.mubr.msk.f32.mxu0 %vm6129_vm0, %v6130_v4 }
 0x1d5   : > { %5208 = vmatmul.mubr.msk.f32.gmra.mrb[18].mxu0 %vm430_vm3, %v1857_v26 }
 0x1d6   : > { %5210 = vmatprep.mubr.msk.f32.mxu0 %vm6129_vm0, %v6130_v4 }
 0x1d9   : > { %5211 = vmatmul.mubr.msk.f32.gmra.mrb[20].mxu0 %vm430_vm3, %v1858_v27 }
 0x1da   : > { %5213 = vmatprep.mubr.msk.f32.mxu0 %vm6129_vm0, %v6130_v4 }
 0x1dd   : > { %5214 = vmatmul.mubr.msk.f32.gmra.mrb[22].mxu0 %vm430_vm3, %v1859_v28 }
 0x1de   : > { %5216 = vmatprep.mubr.msk.f32.mxu0 %vm6129_vm0, %v6130_v4 }
 0x1e1   : > { %5217 = vmatmul.mubr.msk.f32.gmra.mrb[24].mxu0 %vm430_vm3, %v1860_v29 }
 0x1e2   : > { %5219 = vmatprep.mubr.msk.f32.mxu0 %vm6129_vm0, %v6130_v4 }
 0x1e5   : > { %5220 = vmatmul.mubr.msk.f32.gmra.mrb[26].mxu0 %vm430_vm3, %v1861_v30 }
 0x1e6   : > { %5222 = vmatprep.mubr.msk.f32.mxu0 %vm6129_vm0, %v6130_v4 }
 0x1e9   : > { %5223 = vmatmul.mubr.msk.f32.gmra.mrb[28].mxu0 %vm430_vm3, %v1862_v31 }
 0x1ea   : > { %5225 = vmatprep.mubr.msk.f32.mxu0 %vm6129_vm0, %v6130_v4 }
 0x1ed   : > { %5226 = vmatmul.mubr.msk.f32.gmra.mrb[30].mxu0 %vm430_vm3, %v1863_v32 }
 0x1ee   : > { %5228 = vmatprep.mubr.msk.f32.mxu0 %vm6129_vm0, %v6130_v4 }
 0x1f1   : > { %5229 = vmatmul.mubr.msk.f32.gmra.mrb[32].mxu0 %vm430_vm3, %v1864_v33 }
 0x284   : > { %v1985_v38 = vpop.f32.mrb[0].mxu0 }
 0x285   : > { %v2093_v40 = vmul.f32 %v6670_v37, %v1985_v38  ;;  %v5182_v41 = vpop.f32.mrb[1].mxu0 }
 0x287   : > { %v2117_v42 = vadd.f32 %v6675_v39, %v2093_v40 }
 0x288   : > { %v1990_v43 = vpop.f32.mrb[2].mxu0 }
 0x289   : > { %v2134_v44 = vmax.f32 %v2117_v42, 0.0  ;;  %v2094_v45 = vmul.f32 %v6670_v37, %v1990_v43  ;;  %v5185_v46 = vpop.f32.mrb[3].mxu0 }
 0x28b   : > { %2151 = vst.msk [vmem:[#allocation2 + $0x3] sm:$0xff] %vm430_vm3, %v2134_v44  ;;  %v2118_v47 = vadd.f32 %v6675_v39, %v2094_v45 }
 0x28c   : > { %v1995_v48 = vpop.f32.mrb[4].mxu0 }
 0x28d   : > { %v2135_v49 = vmax.f32 %v2118_v47, 0.0  ;;  %v2095_v50 = vmul.f32 %v6670_v37, %v1995_v48  ;;  %v5188_v51 = vpop.f32.mrb[5].mxu0 }
 0x28f   : > { %2152 = vst.msk [vmem:[#allocation2 + $0xb] sm:$0xff] %vm430_vm3, %v2135_v49  ;;  %v2119_v54 = vadd.f32 %v6675_v39, %v2095_v50 }
 0x290   : > { %v2000_v55 = vpop.f32.mrb[6].mxu0 }
 0x291   : > { %v2136_v57 = vmax.f32 %v2119_v54, 0.0  ;;  %v2096_v58 = vmul.f32 %v6670_v37, %v2000_v55  ;;  %v5191_v59 = vpop.f32.mrb[7].mxu0 }
 0x292   : > { %v2188_v60 = vld [vmem:[#allocation2 + $0x1] sm:$0xff] }
 0x293   : > { %2153 = vst.msk [vmem:[#allocation2 + $0x13] sm:$0xff] %vm430_vm3, %v2136_v57  ;;  %v2120_v61 = vadd.f32 %v6675_v39, %v2096_v58  ;;  %5236 = vmatmul.mubr.msk.f32.vlgmr.msra.gmra.mrb[0].mxu1 %vm430_vm3, %v2188_v60 }
 0x294   : > { %v2005_v62 = vpop.f32.mrb[8].mxu0  ;;  %5238 = vmatprep.mubr.msk.f32.mxu1 %vm6129_vm0, %v6130_v4  ;;  %5654 = vmatpush3.bf16.msra.mxu1 %v5653_v56 }
 0x295   : > { %v2137_v63 = vmax.f32 %v2120_v61, 0.0  ;;  %v2097_v0 = vmul.f32 %v6670_v37, %v2005_v62  ;;  %v5194_v1 = vpop.f32.mrb[9].mxu0  ;;  %5655 = vmatprep.subr.bf16.mxu1 %v6128_v2 }
 0x296   : > { %v2189_v3 = vld [vmem:[#allocation2 + $0x9] sm:$0xff] }
 0x297   : > { %2154 = vst.msk [vmem:[#allocation2 + $0x1b] sm:$0xff] %vm430_vm3, %v2137_v63  ;;  %v2121_v5 = vadd.f32 %v6675_v39, %v2097_v0  ;;  %5239 = vmatmul.mubr.msk.f32.gmra.mrb[2].mxu1 %vm430_vm3, %v2189_v3 }
 0x298   : > { %v2010_v6 = vpop.f32.mrb[10].mxu0  ;;  %5241 = vmatprep.mubr.msk.f32.mxu1 %vm6129_vm0, %v6130_v4 }
 0x299   : > { %v2138_v7 = vmax.f32 %v2121_v5, 0.0  ;;  %v2098_v8 = vmul.f32 %v6670_v37, %v2010_v6  ;;  %v5197_v9 = vpop.f32.mrb[11].mxu0 }
 0x29a   : > { %v2190_v10 = vld [vmem:[#allocation2 + $0x11] sm:$0xff] }
 0x29b   : > { %2155 = vst.msk [vmem:[#allocation2 + $0x23] sm:$0xff] %vm430_vm3, %v2138_v7  ;;  %v2122_v11 = vadd.f32 %v6675_v39, %v2098_v8  ;;  %5242 = vmatmul.mubr.msk.f32.gmra.mrb[4].mxu1 %vm430_vm3, %v2190_v10 }
 0x29c   : > { %v2015_v12 = vpop.f32.mrb[12].mxu0  ;;  %5244 = vmatprep.mubr.msk.f32.mxu1 %vm6129_vm0, %v6130_v4 }
 0x29d   : > { %v2139_v13 = vmax.f32 %v2122_v11, 0.0  ;;  %v2099_v14 = vmul.f32 %v6670_v37, %v2015_v12  ;;  %v5200_v15 = vpop.f32.mrb[13].mxu0 }
 0x29e   : > { %v2191_v16 = vld [vmem:[#allocation2 + $0x19] sm:$0xff] }
 0x29f   : > { %2156 = vst.msk [vmem:[#allocation2 + $0x2b] sm:$0xff] %vm430_vm3, %v2139_v13  ;;  %v2123_v17 = vadd.f32 %v6675_v39, %v2099_v14  ;;  %5245 = vmatmul.mubr.msk.f32.gmra.mrb[6].mxu1 %vm430_vm3, %v2191_v16 }
 0x2a0   : > { %v2020_v18 = vpop.f32.mrb[14].mxu0  ;;  %5247 = vmatprep.mubr.msk.f32.mxu1 %vm6129_vm0, %v6130_v4 }
 0x2a1   : > { %v2140_v19 = vmax.f32 %v2123_v17, 0.0  ;;  %v2100_v20 = vmul.f32 %v6670_v37, %v2020_v18  ;;  %v5203_v21 = vpop.f32.mrb[15].mxu0 }
 0x2a2   : > { %v2192_v22 = vld [vmem:[#allocation2 + $0x21] sm:$0xff] }
 0x2a3   : > { %2157 = vst.msk [vmem:[#allocation2 + $0x33] sm:$0xff] %vm430_vm3, %v2140_v19  ;;  %v2124_v23 = vadd.f32 %v6675_v39, %v2100_v20  ;;  %5248 = vmatmul.mubr.msk.f32.gmra.mrb[8].mxu1 %vm430_vm3, %v2192_v22  ;;  %v4467_v20 = vld [vmem:[%s7288_s5 + $0x20] sm:$0xff]  ;;  %v4468_v21 = vld [vmem:[%s7288_s5 + $0x28] sm:$0xff] }
 0x2a4   : > { %v2025_v24 = vpop.f32.mrb[16].mxu0  ;;  %5250 = vmatprep.mubr.msk.f32.mxu1 %vm6129_vm0, %v6130_v4  ;;  %v5656_v22 = vpack.c.bf16 %v4468_v21, %v4467_v20  ;;  %v3086_v21 = vld [vmem:[#allocation2 + $0x4] sm:$0xff] }
 0x2a5   : > { %v2141_v25 = vmax.f32 %v2124_v23, 0.0  ;;  %v2101_v26 = vmul.f32 %v6670_v37, %v2025_v24  ;;  %v5206_v27 = vpop.f32.mrb[17].mxu0  ;;  %v2169_v23 = vld [vmem:[#allocation2] sm:$0xff]  ;;  %v2170_v24 = vld [vmem:[#allocation2 + $0x8] sm:$0xff] }
 0x2a6   : > { %v2193_v28 = vld [vmem:[#allocation2 + $0x29] sm:$0xff]  ;;  %v2173_v27 = vld [vmem:[#allocation2 + $0x20] sm:$0xff] }
 0x2a7   : > { %2158 = vst.msk [vmem:[#allocation2 + $0x3b] sm:$0xff] %vm430_vm3, %v2141_v25  ;;  %v2125_v29 = vadd.f32 %v6675_v39, %v2101_v26  ;;  %5251 = vmatmul.mubr.msk.f32.gmra.mrb[10].mxu1 %vm430_vm3, %v2193_v28  ;;  %v2171_v25 = vld [vmem:[#allocation2 + $0x10] sm:$0xff]  ;;  %v2172_v26 = vld [vmem:[#allocation2 + $0x18] sm:$0xff]  ;;  %v2174_v28 = vld [vmem:[#allocation2 + $0x28] sm:$0xff] }
 0x2a8   : > { %v2030_v30 = vpop.f32.mrb[18].mxu0  ;;  %5253 = vmatprep.mubr.msk.f32.mxu1 %vm6129_vm0, %v6130_v4 }
 0x2a9   : > { %v2142_v31 = vmax.f32 %v2125_v29, 0.0  ;;  %v2102_v32 = vmul.f32 %v6670_v37, %v2030_v30  ;;  %v5209_v33 = vpop.f32.mrb[19].mxu0 }
 0x2aa   : > { %v2194_v34 = vld [vmem:[#allocation2 + $0x31] sm:$0xff] }
 0x2ab   : > { %2159 = vst.msk [vmem:[#allocation2 + $0x43] sm:$0xff] %vm430_vm3, %v2142_v31  ;;  %v2126_v35 = vadd.f32 %v6675_v39, %v2102_v32  ;;  %5254 = vmatmul.mubr.msk.f32.gmra.mrb[12].mxu1 %vm430_vm3, %v2194_v34  ;;  %v2175_v29 = vld [vmem:[#allocation2 + $0x30] sm:$0xff] }
 0x2ac   : > { %2168 = vst.msk [vmem:[#allocation2 + $0x43] sm:$0x3f] %vm419_vm2, %v6130_v4  ;;  %v2035_v36 = vpop.f32.mrb[20].mxu0  ;;  %5256 = vmatprep.mubr.msk.f32.mxu1 %vm6129_vm0, %v6130_v4 }
 0x2ad   : > { %v2143_v38 = vmax.f32 %v2126_v35, 0.0  ;;  %v2103_v40 = vmul.f32 %v6670_v37, %v2035_v36  ;;  %v5212_v41 = vpop.f32.mrb[21].mxu0 }
 0x2ae   : > { %v2195_v42 = vld [vmem:[#allocation2 + $0x39] sm:$0xff]  ;;  %v4486_v41 = vld [vmem:[%s7288_s5 + $0x30] sm:$0xff] }
 0x2af   : > { %2160 = vst.msk [vmem:[#allocation2 + $0x4b] sm:$0xff] %vm430_vm3, %v2143_v38  ;;  %v2127_v43 = vadd.f32 %v6675_v39, %v2103_v40  ;;  %5257 = vmatmul.mubr.msk.f32.gmra.mrb[14].mxu1 %vm430_vm3, %v2195_v42  ;;  %v2176_v30 = vld [vmem:[#allocation2 + $0x38] sm:$0xff] }
 0x2b0   : > { %v2040_v44 = vpop.f32.mrb[22].mxu0  ;;  %5259 = vmatprep.mubr.msk.f32.mxu1 %vm6129_vm0, %v6130_v4  ;;  %v4487_v42 = vld [vmem:[%s7288_s5 + $0x38] sm:$0xff] }
 0x2b1   : > { %v2144_v45 = vmax.f32 %v2127_v43, 0.0  ;;  %v2104_v46 = vmul.f32 %v6670_v37, %v2040_v44  ;;  %v5215_v47 = vpop.f32.mrb[23].mxu0  ;;  %v5659_v44 = vpack.c.bf16 %v4487_v42, %v4486_v41 }
 0x2b2   : > { %v2612_v47 = vld [vmem:[#allocation2 + $0x12] sm:$0xff] }
 0x2b3   : > { %2161 = vst.msk [vmem:[#allocation2 + $0x53] sm:$0xff] %vm430_vm3, %v2144_v45  ;;  %v2128_v48 = vadd.f32 %v6675_v39, %v2104_v46  ;;  %v2196_v49 = vld [vmem:[#allocation2 + $0x41] sm:$0xff]  ;;  %v2611_v46 = vld [vmem:[#allocation2 + $0xa] sm:$0xff] }
 0x2b4   : > { %v2045_v50 = vpop.f32.mrb[24].mxu0  ;;  %5260 = vmatmul.mubr.msk.f32.gmra.mrb[16].mxu1 %vm430_vm3, %v2196_v49  ;;  %v2177_v31 = vld [vmem:[#allocation2 + $0x40] sm:$0xff] }
 0x2b5   : > { %v2145_v51 = vmax.f32 %v2128_v48, 0.0  ;;  %v2105_v52 = vmul.f32 %v6670_v37, %v2045_v50  ;;  %v5218_v53 = vpop.f32.mrb[25].mxu0  ;;  %5262 = vmatprep.mubr.msk.f32.mxu1 %vm6129_vm0, %v6130_v4  ;;  %v2610_v45 = vld [vmem:[#allocation2 + $0x2] sm:$0xff]  ;;  %v2613_v48 = vld [vmem:[#allocation2 + $0x1a] sm:$0xff]  ;;  %v2615_v50 = vld [vmem:[#allocation2 + $0x2a] sm:$0xff] }
 0x2b6   : > { %v2197_v54 = vld [vmem:[#allocation2 + $0x49] sm:$0xff] }
 0x2b7   : > { %2162 = vst.msk [vmem:[#allocation2 + $0x5b] sm:$0xff] %vm430_vm3, %v2145_v51  ;;  %v2129_v55 = vadd.f32 %v6675_v39, %v2105_v52  ;;  %v2178_v32 = vld [vmem:[#allocation2 + $0x48] sm:$0xff]  ;;  %v2616_v51 = vld [vmem:[#allocation2 + $0x32] sm:$0xff]  ;;  %v2617_v52 = vld [vmem:[#allocation2 + $0x3a] sm:$0xff] }
 0x2b8   : > { %v2050_v56 = vpop.f32.mrb[26].mxu0  ;;  %5263 = vmatmul.mubr.msk.f32.gmra.mrb[18].mxu1 %vm430_vm3, %v2197_v54  ;;  %v2614_v49 = vld [vmem:[#allocation2 + $0x22] sm:$0xff]  ;;  %v2619_v54 = vld [vmem:[#allocation2 + $0x4a] sm:$0xff] }
 0x2b9   : > { %v2146_v57 = vmax.f32 %v2129_v55, 0.0  ;;  %v2106_v58 = vmul.f32 %v6670_v37, %v2050_v56  ;;  %v5221_v59 = vpop.f32.mrb[27].mxu0  ;;  %5265 = vmatprep.mubr.msk.f32.mxu1 %vm6129_vm0, %v6130_v4  ;;  %v2618_v53 = vld [vmem:[#allocation2 + $0x42] sm:$0xff] }
 0x2ba   : > { %v2198_v60 = vld [vmem:[#allocation2 + $0x51] sm:$0xff] }
 0x2bb   : > { %2163 = vst.msk [vmem:[#allocation2 + $0x63] sm:$0xff] %vm430_vm3, %v2146_v57  ;;  %v2130_v61 = vadd.f32 %v6675_v39, %v2106_v58  ;;  %v2179_v33 = vld [vmem:[#allocation2 + $0x50] sm:$0xff] }
 0x2bc   : > { %v2055_v62 = vpop.f32.mrb[28].mxu0  ;;  %5266 = vmatmul.mubr.msk.f32.gmra.mrb[20].mxu1 %vm430_vm3, %v2198_v60  ;;  %v2620_v55 = vld [vmem:[#allocation2 + $0x52] sm:$0xff] }
 0x2bd   : > { %v2147_v63 = vmax.f32 %v2130_v61, 0.0  ;;  %v2107_v0 = vmul.f32 %v6670_v37, %v2055_v62  ;;  %v5224_v1 = vpop.f32.mrb[29].mxu0  ;;  %5268 = vmatprep.mubr.msk.f32.mxu1 %vm6129_vm0, %v6130_v4  ;;  %v4505_v61 = vld [vmem:[%s7288_s5 + $0x40] sm:$0xff]  ;;  %v4506_v62 = vld [vmem:[%s7288_s5 + $0x48] sm:$0xff] }
 0x2be   : > { %v2199_v3 = vld [vmem:[#allocation2 + $0x59] sm:$0xff]  ;;  %v2848_v1 = vld [vmem:[#allocation2 + $0x3] sm:$0xff] }
 0x2bf   : > { %2164 = vst.msk [vmem:[#allocation2 + $0x6b] sm:$0xff] %vm430_vm3, %v2147_v63  ;;  %v2131_v5 = vadd.f32 %v6675_v39, %v2107_v0  ;;  %v2180_v34 = vld [vmem:[#allocation2 + $0x58] sm:$0xff]  ;;  %v5662_v0 = vpack.c.bf16 %v4506_v62, %v4505_v61  ;;  %v3563_v61 = vld [vmem:[#allocation2 + $0xe] sm:$0xff] }
 0x2c0   : > { %v2060_v6 = vpop.f32.mrb[30].mxu0  ;;  %5269 = vmatmul.mubr.msk.f32.gmra.mrb[22].mxu1 %vm430_vm3, %v2199_v3  ;;  %v2621_v56 = vld [vmem:[#allocation2 + $0x5a] sm:$0xff]  ;;  %v2849_v3 = vld [vmem:[#allocation2 + $0xb] sm:$0xff] }
 0x2c1   : > { %v2148_v7 = vmax.f32 %v2131_v5, 0.0  ;;  %v2108_v8 = vmul.f32 %v6670_v37, %v2060_v6  ;;  %v5227_v9 = vpop.f32.mrb[31].mxu0  ;;  %5271 = vmatprep.mubr.msk.f32.mxu1 %vm6129_vm0, %v6130_v4  ;;  %v2850_v5 = vld [vmem:[#allocation2 + $0x13] sm:$0xff]  ;;  %v2851_v6 = vld [vmem:[#allocation2 + $0x1b] sm:$0xff] }
 0x2c2   : > { %v2200_v10 = vld [vmem:[#allocation2 + $0x61] sm:$0xff]  ;;  %v2854_v9 = vld [vmem:[#allocation2 + $0x33] sm:$0xff] }
 0x2c3   : > { %2165 = vst.msk [vmem:[#allocation2 + $0x73] sm:$0xff] %vm430_vm3, %v2148_v7  ;;  %v2132_v11 = vadd.f32 %v6675_v39, %v2108_v8  ;;  %v2181_v35 = vld [vmem:[#allocation2 + $0x60] sm:$0xff]  ;;  %v2853_v8 = vld [vmem:[#allocation2 + $0x2b] sm:$0xff]  ;;  %v3564_v62 = vld [vmem:[#allocation2 + $0x16] sm:$0xff] }
 0x2c4   : > { %v2065_v12 = vpop.f32.mrb[32].mxu0  ;;  %5272 = vmatmul.mubr.msk.f32.gmra.mrb[24].mxu1 %vm430_vm3, %v2200_v10  ;;  %v2622_v57 = vld [vmem:[#allocation2 + $0x62] sm:$0xff] }
 0x2c5   : > { %v2149_v13 = vmax.f32 %v2132_v11, 0.0  ;;  %v2109_v14 = vmul.f32 %v6670_v37, %v2065_v12  ;;  %v5230_v15 = vpop.f32.mrb[33].mxu0  ;;  %5274 = vmatprep.mubr.msk.f32.mxu1 %vm6129_vm0, %v6130_v4  ;;  %v2852_v7 = vld [vmem:[#allocation2 + $0x23] sm:$0xff]  ;;  %v2855_v10 = vld [vmem:[#allocation2 + $0x3b] sm:$0xff]  ;;  %v2857_v12 = vld [vmem:[#allocation2 + $0x4b] sm:$0xff] }
 0x2c6   : > { %v2201_v16 = vld [vmem:[#allocation2 + $0x69] sm:$0xff] }
 0x2c7   : > { %2166 = vst.msk [vmem:[#allocation2 + $0x7b] sm:$0xff] %vm430_vm3, %v2149_v13  ;;  %v2133_v17 = vadd.f32 %v6675_v39, %v2109_v14  ;;  %v2182_v36 = vld [vmem:[#allocation2 + $0x68] sm:$0xff]  ;;  %v2858_v13 = vld [vmem:[#allocation2 + $0x53] sm:$0xff]  ;;  %v2859_v14 = vld [vmem:[#allocation2 + $0x5b] sm:$0xff] }
 0x2c8   : > { %5275 = vmatmul.mubr.msk.f32.gmra.mrb[26].mxu1 %vm430_vm3, %v2201_v16  ;;  %v2623_v58 = vld [vmem:[#allocation2 + $0x6a] sm:$0xff] }
 0x2c9   : > { %v2150_v18 = vmax.f32 %v2133_v17, 0.0  ;;  %5277 = vmatprep.mubr.msk.f32.mxu1 %vm6129_vm0, %v6130_v4  ;;  %v2856_v11 = vld [vmem:[#allocation2 + $0x43] sm:$0xff]  ;;  %v2861_v16 = vld [vmem:[#allocation2 + $0x6b] sm:$0xff] }
 0x2ca   : > { %v2202_v19 = vld [vmem:[#allocation2 + $0x71] sm:$0xff]  ;;  %v2860_v15 = vld [vmem:[#allocation2 + $0x63] sm:$0xff] }
 0x2cb   : > { %2167 = vst.msk [vmem:[#allocation2 + $0x83] sm:$0x3f] %vm419_vm2, %v2150_v18  ;;  %v2183_v38 = vld [vmem:[#allocation2 + $0x70] sm:$0xff] }
 0x2cc   : > { %5278 = vmatmul.mubr.msk.f32.gmra.mrb[28].mxu1 %vm430_vm3, %v2202_v19  ;;  %v2624_v59 = vld [vmem:[#allocation2 + $0x72] sm:$0xff] }
 0x2cd   : > { %5280 = vmatprep.mubr.msk.f32.mxu1 %vm6129_vm0, %v6130_v4  ;;  %v2862_v17 = vld [vmem:[#allocation2 + $0x73] sm:$0xff] }
 0x2ce   : > { %v2203_v37 = vld [vmem:[#allocation2 + $0x79] sm:$0xff]  ;;  %v4524_v19 = vld [vmem:[%s7288_s5 + $0x50] sm:$0xff] }
 0x2cf   : > { %v2184_v40 = vld [vmem:[#allocation2 + $0x78] sm:$0xff] }
 0x2d0   : > { %5281 = vmatmul.mubr.msk.f32.gmra.mrb[30].mxu1 %vm430_vm3, %v2203_v37  ;;  %v2625_v60 = vld [vmem:[#allocation2 + $0x7a] sm:$0xff] }
 0x2d1   : > { %5283 = vmatprep.mubr.msk.f32.mxu1 %vm6129_vm0, %v6130_v4  ;;  %v2863_v18 = vld [vmem:[#allocation2 + $0x7b] sm:$0xff] }
 0x2d2   : > { %v2204_v39 = vld [vmem:[#allocation2 + $0x81] sm:$0x3f]  ;;  %v4525_v37 = vld [vmem:[%s7288_s5 + $0x58] sm:$0xff] }
 0x2d3   : > { %v2185_v43 = vld [vmem:[#allocation2 + $0x80] sm:$0x3f]  ;;  %v5665_v20 = vpack.c.bf16 %v4525_v37, %v4524_v19 }
 0x2d4   : > { %5284 = vmatmul.mubr.msk.f32.gmra.mrb[32].mxu1 %vm430_vm3, %v2204_v39  ;;  %v2626_v63 = vld [vmem:[#allocation2 + $0x82] sm:$0x3f]  ;;  %v7145_v37 = vld [vmem:[%s7289_s6] ss:$0 sm:$0xff] }
 0x2d5   : > { %5290 = vmatprep.mubr.msk.f32.mxu1 %vm6129_vm0, %v6130_v4  ;;  %v2864_v39 = vld [vmem:[#allocation2 + $0x83] sm:$0x3f] }
 0x2d6   : > { %v3102_v41 = vld [vmem:[#allocation2 + $0x84] sm:$0x3f] }
 0x2d8   : > { %5291 = vmatmul.mubr.msk.f32.vlgmr.msra.gmra.mrb[0].mxu1 %vm430_vm3, %v2169_v23  ;;  %v3088_v23 = vld [vmem:[#allocation2 + $0x14] sm:$0xff] }
 0x2d9   : > { %5293 = vmatprep.mubr.msk.f32.mxu1 %vm6129_vm0, %v6130_v4  ;;  %5657 = vmatpush3.bf16.msra.mxu1 %v5656_v22  ;;  %v3087_v22 = vld [vmem:[#allocation2 + $0xc] sm:$0xff] }
 0x2da   : > { %5658 = vmatprep.subr.bf16.mxu1 %v6128_v2 }
 0x2dc   : > { %5294 = vmatmul.mubr.msk.f32.gmra.mrb[2].mxu1 %vm430_vm3, %v2170_v24  ;;  %v3089_v24 = vld [vmem:[#allocation2 + $0x1c] sm:$0xff] }
 0x2dd   : > { %5296 = vmatprep.mubr.msk.f32.mxu1 %vm6129_vm0, %v6130_v4 }
 0x2e0   : > { %5297 = vmatmul.mubr.msk.f32.gmra.mrb[4].mxu1 %vm430_vm3, %v2171_v25  ;;  %v3090_v25 = vld [vmem:[#allocation2 + $0x24] sm:$0xff] }
 0x2e1   : > { %5299 = vmatprep.mubr.msk.f32.mxu1 %vm6129_vm0, %v6130_v4 }
 0x2e4   : > { %5300 = vmatmul.mubr.msk.f32.gmra.mrb[6].mxu1 %vm430_vm3, %v2172_v26  ;;  %v3091_v26 = vld [vmem:[#allocation2 + $0x2c] sm:$0xff] }
 0x2e5   : > { %5302 = vmatprep.mubr.msk.f32.mxu1 %vm6129_vm0, %v6130_v4 }
 0x2e8   : > { %5303 = vmatmul.mubr.msk.f32.gmra.mrb[8].mxu1 %vm430_vm3, %v2173_v27  ;;  %v3092_v27 = vld [vmem:[#allocation2 + $0x34] sm:$0xff] }
 0x2e9   : > { %5305 = vmatprep.mubr.msk.f32.mxu1 %vm6129_vm0, %v6130_v4 }
 0x2ec   : > { %5306 = vmatmul.mubr.msk.f32.gmra.mrb[10].mxu1 %vm430_vm3, %v2174_v28  ;;  %v3093_v28 = vld [vmem:[#allocation2 + $0x3c] sm:$0xff] }
 0x2ed   : > { %5308 = vmatprep.mubr.msk.f32.mxu1 %vm6129_vm0, %v6130_v4 }
 0x2f0   : > { %5309 = vmatmul.mubr.msk.f32.gmra.mrb[12].mxu1 %vm430_vm3, %v2175_v29  ;;  %v3094_v29 = vld [vmem:[#allocation2 + $0x44] sm:$0xff] }
 0x2f1   : > { %5311 = vmatprep.mubr.msk.f32.mxu1 %vm6129_vm0, %v6130_v4 }
 0x2f4   : > { %5312 = vmatmul.mubr.msk.f32.gmra.mrb[14].mxu1 %vm430_vm3, %v2176_v30  ;;  %v3095_v30 = vld [vmem:[#allocation2 + $0x4c] sm:$0xff] }
 0x2f5   : > { %5314 = vmatprep.mubr.msk.f32.mxu1 %vm6129_vm0, %v6130_v4 }
 0x2f8   : > { %5315 = vmatmul.mubr.msk.f32.gmra.mrb[16].mxu1 %vm430_vm3, %v2177_v31  ;;  %v3096_v31 = vld [vmem:[#allocation2 + $0x54] sm:$0xff] }
 0x2f9   : > { %5317 = vmatprep.mubr.msk.f32.mxu1 %vm6129_vm0, %v6130_v4 }
 0x2fc   : > { %5318 = vmatmul.mubr.msk.f32.gmra.mrb[18].mxu1 %vm430_vm3, %v2178_v32  ;;  %v3097_v32 = vld [vmem:[#allocation2 + $0x5c] sm:$0xff] }
 0x2fd   : > { %5320 = vmatprep.mubr.msk.f32.mxu1 %vm6129_vm0, %v6130_v4 }
 0x300   : > { %5321 = vmatmul.mubr.msk.f32.gmra.mrb[20].mxu1 %vm430_vm3, %v2179_v33  ;;  %v3098_v33 = vld [vmem:[#allocation2 + $0x64] sm:$0xff] }
 0x301   : > { %5323 = vmatprep.mubr.msk.f32.mxu1 %vm6129_vm0, %v6130_v4 }
 0x304   : > { %5324 = vmatmul.mubr.msk.f32.gmra.mrb[22].mxu1 %vm430_vm3, %v2180_v34  ;;  %v3099_v34 = vld [vmem:[#allocation2 + $0x6c] sm:$0xff] }
 0x305   : > { %5326 = vmatprep.mubr.msk.f32.mxu1 %vm6129_vm0, %v6130_v4 }
 0x308   : > { %5327 = vmatmul.mubr.msk.f32.gmra.mrb[24].mxu1 %vm430_vm3, %v2181_v35  ;;  %v3100_v35 = vld [vmem:[#allocation2 + $0x74] sm:$0xff] }
 0x309   : > { %5329 = vmatprep.mubr.msk.f32.mxu1 %vm6129_vm0, %v6130_v4 }
 0x30c   : > { %5330 = vmatmul.mubr.msk.f32.gmra.mrb[26].mxu1 %vm430_vm3, %v2182_v36  ;;  %v3101_v36 = vld [vmem:[#allocation2 + $0x7c] sm:$0xff] }
 0x30d   : > { %5332 = vmatprep.mubr.msk.f32.mxu1 %vm6129_vm0, %v6130_v4 }
 0x310   : > { %5333 = vmatmul.mubr.msk.f32.gmra.mrb[28].mxu1 %vm430_vm3, %v2183_v38  ;;  %v4543_v38 = vld [vmem:[%s7288_s5 + $0x60] sm:$0xff] }
 0x311   : > { %5335 = vmatprep.mubr.msk.f32.mxu1 %vm6129_vm0, %v6130_v4 }
 0x314   : > { %5336 = vmatmul.mubr.msk.f32.gmra.mrb[30].mxu1 %vm430_vm3, %v2184_v40  ;;  %v4544_v40 = vld [vmem:[%s7288_s5 + $0x68] sm:$0xff] }
 0x315   : > { %5338 = vmatprep.mubr.msk.f32.mxu1 %vm6129_vm0, %v6130_v4  ;;  %v5668_v42 = vpack.c.bf16 %v4544_v40, %v4543_v38 }
 0x318   : > { %5339 = vmatmul.mubr.msk.f32.gmra.mrb[32].mxu1 %vm430_vm3, %v2185_v43  ;;  %v3324_v43 = vld [vmem:[#allocation2 + $0x5] sm:$0xff] }
 0x319   : > { %5345 = vmatprep.mubr.msk.f32.mxu1 %vm6129_vm0, %v6130_v4 }
 0x31c   : > { %5346 = vmatmul.mubr.msk.f32.vlgmr.msra.gmra.mrb[0].mxu1 %vm430_vm3, %v2610_v45  ;;  %v3326_v45 = vld [vmem:[#allocation2 + $0x15] sm:$0xff] }
 0x31d   : > { %5348 = vmatprep.mubr.msk.f32.mxu1 %vm6129_vm0, %v6130_v4  ;;  %5660 = vmatpush3.bf16.msra.mxu1 %v5659_v44  ;;  %v3325_v44 = vld [vmem:[#allocation2 + $0xd] sm:$0xff] }
 0x31e   : > { %5661 = vmatprep.subr.bf16.mxu1 %v6128_v2 }
 0x320   : > { %5349 = vmatmul.mubr.msk.f32.gmra.mrb[2].mxu1 %vm430_vm3, %v2611_v46  ;;  %v3327_v46 = vld [vmem:[#allocation2 + $0x1d] sm:$0xff] }
 0x321   : > { %5351 = vmatprep.mubr.msk.f32.mxu1 %vm6129_vm0, %v6130_v4 }
 0x324   : > { %5352 = vmatmul.mubr.msk.f32.gmra.mrb[4].mxu1 %vm430_vm3, %v2612_v47  ;;  %v3328_v47 = vld [vmem:[#allocation2 + $0x25] sm:$0xff] }
 0x325   : > { %5354 = vmatprep.mubr.msk.f32.mxu1 %vm6129_vm0, %v6130_v4 }
 0x328   : > { %5355 = vmatmul.mubr.msk.f32.gmra.mrb[6].mxu1 %vm430_vm3, %v2613_v48  ;;  %v3329_v48 = vld [vmem:[#allocation2 + $0x2d] sm:$0xff] }
 0x329   : > { %5357 = vmatprep.mubr.msk.f32.mxu1 %vm6129_vm0, %v6130_v4 }
 0x32c   : > { %5358 = vmatmul.mubr.msk.f32.gmra.mrb[8].mxu1 %vm430_vm3, %v2614_v49  ;;  %v3330_v49 = vld [vmem:[#allocation2 + $0x35] sm:$0xff] }
 0x32d   : > { %5360 = vmatprep.mubr.msk.f32.mxu1 %vm6129_vm0, %v6130_v4 }
 0x330   : > { %5361 = vmatmul.mubr.msk.f32.gmra.mrb[10].mxu1 %vm430_vm3, %v2615_v50  ;;  %v3331_v50 = vld [vmem:[#allocation2 + $0x3d] sm:$0xff] }
 0x331   : > { %5363 = vmatprep.mubr.msk.f32.mxu1 %vm6129_vm0, %v6130_v4 }
 0x334   : > { %5364 = vmatmul.mubr.msk.f32.gmra.mrb[12].mxu1 %vm430_vm3, %v2616_v51  ;;  %v3332_v51 = vld [vmem:[#allocation2 + $0x45] sm:$0xff] }
 0x335   : > { %5366 = vmatprep.mubr.msk.f32.mxu1 %vm6129_vm0, %v6130_v4 }
 0x338   : > { %5367 = vmatmul.mubr.msk.f32.gmra.mrb[14].mxu1 %vm430_vm3, %v2617_v52  ;;  %v3333_v52 = vld [vmem:[#allocation2 + $0x4d] sm:$0xff] }
 0x339   : > { %5369 = vmatprep.mubr.msk.f32.mxu1 %vm6129_vm0, %v6130_v4 }
 0x33c   : > { %5370 = vmatmul.mubr.msk.f32.gmra.mrb[16].mxu1 %vm430_vm3, %v2618_v53  ;;  %v3334_v53 = vld [vmem:[#allocation2 + $0x55] sm:$0xff] }
 0x33d   : > { %5372 = vmatprep.mubr.msk.f32.mxu1 %vm6129_vm0, %v6130_v4 }
 0x340   : > { %5373 = vmatmul.mubr.msk.f32.gmra.mrb[18].mxu1 %vm430_vm3, %v2619_v54  ;;  %v3335_v54 = vld [vmem:[#allocation2 + $0x5d] sm:$0xff] }
 0x341   : > { %5375 = vmatprep.mubr.msk.f32.mxu1 %vm6129_vm0, %v6130_v4 }
 0x344   : > { %5376 = vmatmul.mubr.msk.f32.gmra.mrb[20].mxu1 %vm430_vm3, %v2620_v55  ;;  %v3336_v55 = vld [vmem:[#allocation2 + $0x65] sm:$0xff] }
 0x345   : > { %5378 = vmatprep.mubr.msk.f32.mxu1 %vm6129_vm0, %v6130_v4 }
 0x348   : > { %5379 = vmatmul.mubr.msk.f32.gmra.mrb[22].mxu1 %vm430_vm3, %v2621_v56  ;;  %v3337_v56 = vld [vmem:[#allocation2 + $0x6d] sm:$0xff] }
 0x349   : > { %5381 = vmatprep.mubr.msk.f32.mxu1 %vm6129_vm0, %v6130_v4 }
 0x34c   : > { %5382 = vmatmul.mubr.msk.f32.gmra.mrb[24].mxu1 %vm430_vm3, %v2622_v57  ;;  %v3338_v57 = vld [vmem:[#allocation2 + $0x75] sm:$0xff] }
 0x34d   : > { %5384 = vmatprep.mubr.msk.f32.mxu1 %vm6129_vm0, %v6130_v4 }
 0x350   : > { %5385 = vmatmul.mubr.msk.f32.gmra.mrb[26].mxu1 %vm430_vm3, %v2623_v58  ;;  %v3339_v58 = vld [vmem:[#allocation2 + $0x7d] sm:$0xff] }
 0x351   : > { %5387 = vmatprep.mubr.msk.f32.mxu1 %vm6129_vm0, %v6130_v4 }
 0x354   : > { %5388 = vmatmul.mubr.msk.f32.gmra.mrb[28].mxu1 %vm430_vm3, %v2624_v59  ;;  %v3340_v59 = vld [vmem:[#allocation2 + $0x85] sm:$0x3f] }
 0x355   : > { %5390 = vmatprep.mubr.msk.f32.mxu1 %vm6129_vm0, %v6130_v4 }
 0x358   : > { %5391 = vmatmul.mubr.msk.f32.gmra.mrb[30].mxu1 %vm430_vm3, %v2625_v60  ;;  %v3562_v60 = vld [vmem:[#allocation2 + $0x6] sm:$0xff] }
 0x359   : > { %5393 = vmatprep.mubr.msk.f32.mxu1 %vm6129_vm0, %v6130_v4 }
 0x35c   : > { %5394 = vmatmul.mubr.msk.f32.gmra.mrb[32].mxu1 %vm430_vm3, %v2626_v63  ;;  %v3565_v63 = vld [vmem:[#allocation2 + $0x1e] sm:$0xff] }
 0x35d   : > { %5400 = vmatprep.mubr.msk.f32.mxu1 %vm6129_vm0, %v6130_v4 }
 0x360   : > { %5401 = vmatmul.mubr.msk.f32.vlgmr.msra.gmra.mrb[0].mxu1 %vm430_vm3, %v2848_v1  ;;  %v3567_v1 = vld [vmem:[#allocation2 + $0x2e] sm:$0xff] }
 0x361   : > { %5403 = vmatprep.mubr.msk.f32.mxu1 %vm6129_vm0, %v6130_v4  ;;  %5663 = vmatpush3.bf16.msra.mxu1 %v5662_v0  ;;  %v3566_v0 = vld [vmem:[#allocation2 + $0x26] sm:$0xff] }
 0x362   : > { %5664 = vmatprep.subr.bf16.mxu1 %v6128_v2 }
 0x364   : > { %5404 = vmatmul.mubr.msk.f32.gmra.mrb[2].mxu1 %vm430_vm3, %v2849_v3  ;;  %v3568_v3 = vld [vmem:[#allocation2 + $0x36] sm:$0xff] }
 0x365   : > { %5406 = vmatprep.mubr.msk.f32.mxu1 %vm6129_vm0, %v6130_v4 }
 0x368   : > { %5407 = vmatmul.mubr.msk.f32.gmra.mrb[4].mxu1 %vm430_vm3, %v2850_v5  ;;  %v3569_v5 = vld [vmem:[#allocation2 + $0x3e] sm:$0xff] }
 0x369   : > { %5409 = vmatprep.mubr.msk.f32.mxu1 %vm6129_vm0, %v6130_v4 }
 0x36c   : > { %5410 = vmatmul.mubr.msk.f32.gmra.mrb[6].mxu1 %vm430_vm3, %v2851_v6  ;;  %v3570_v6 = vld [vmem:[#allocation2 + $0x46] sm:$0xff] }
 0x36d   : > { %5412 = vmatprep.mubr.msk.f32.mxu1 %vm6129_vm0, %v6130_v4 }
 0x370   : > { %5413 = vmatmul.mubr.msk.f32.gmra.mrb[8].mxu1 %vm430_vm3, %v2852_v7  ;;  %v3571_v7 = vld [vmem:[#allocation2 + $0x4e] sm:$0xff] }
 0x371   : > { %5415 = vmatprep.mubr.msk.f32.mxu1 %vm6129_vm0, %v6130_v4 }
 0x374   : > { %5416 = vmatmul.mubr.msk.f32.gmra.mrb[10].mxu1 %vm430_vm3, %v2853_v8  ;;  %v3572_v8 = vld [vmem:[#allocation2 + $0x56] sm:$0xff] }
 0x375   : > { %5418 = vmatprep.mubr.msk.f32.mxu1 %vm6129_vm0, %v6130_v4 }
 0x378   : > { %5419 = vmatmul.mubr.msk.f32.gmra.mrb[12].mxu1 %vm430_vm3, %v2854_v9  ;;  %v3573_v9 = vld [vmem:[#allocation2 + $0x5e] sm:$0xff] }
 0x379   : > { %5421 = vmatprep.mubr.msk.f32.mxu1 %vm6129_vm0, %v6130_v4 }
 0x37c   : > { %5422 = vmatmul.mubr.msk.f32.gmra.mrb[14].mxu1 %vm430_vm3, %v2855_v10  ;;  %v3574_v10 = vld [vmem:[#allocation2 + $0x66] sm:$0xff] }
 0x37d   : > { %5424 = vmatprep.mubr.msk.f32.mxu1 %vm6129_vm0, %v6130_v4 }
 0x380   : > { %5425 = vmatmul.mubr.msk.f32.gmra.mrb[16].mxu1 %vm430_vm3, %v2856_v11  ;;  %v3575_v11 = vld [vmem:[#allocation2 + $0x6e] sm:$0xff] }
 0x381   : > { %5427 = vmatprep.mubr.msk.f32.mxu1 %vm6129_vm0, %v6130_v4 }
 0x384   : > { %5428 = vmatmul.mubr.msk.f32.gmra.mrb[18].mxu1 %vm430_vm3, %v2857_v12  ;;  %v3576_v12 = vld [vmem:[#allocation2 + $0x76] sm:$0xff] }
 0x385   : > { %5430 = vmatprep.mubr.msk.f32.mxu1 %vm6129_vm0, %v6130_v4 }
 0x388   : > { %5431 = vmatmul.mubr.msk.f32.gmra.mrb[20].mxu1 %vm430_vm3, %v2858_v13  ;;  %v3577_v13 = vld [vmem:[#allocation2 + $0x7e] sm:$0xff] }
 0x389   : > { %5433 = vmatprep.mubr.msk.f32.mxu1 %vm6129_vm0, %v6130_v4 }
 0x38c   : > { %5434 = vmatmul.mubr.msk.f32.gmra.mrb[22].mxu1 %vm430_vm3, %v2859_v14  ;;  %v3578_v14 = vld [vmem:[#allocation2 + $0x86] sm:$0x3f] }
 0x38d   : > { %5436 = vmatprep.mubr.msk.f32.mxu1 %vm6129_vm0, %v6130_v4 }
 0x390   : > { %5437 = vmatmul.mubr.msk.f32.gmra.mrb[24].mxu1 %vm430_vm3, %v2860_v15  ;;  %v7132_v15 = vld.sshfl [vmem:[%s7284_s1] sm:$0x33 pattern:$0x76325410] }
 0x391   : > { %5439 = vmatprep.mubr.msk.f32.mxu1 %vm6129_vm0, %v6130_v4 }
 0x394   : > { %5440 = vmatmul.mubr.msk.f32.gmra.mrb[26].mxu1 %vm430_vm3, %v2861_v16  ;;  %v3874_v16 = vcombine.high %v7132_v15, %v7132_v15 }
 0x395   : > { %5442 = vmatprep.mubr.msk.f32.mxu1 %vm6129_vm0, %v6130_v4 }
 0x396   : > { %4566 = vmatprep.mubr.msk.f32.mxu0 %vm3876_vm4, %v3874_v16 }
 0x398   : > { %5443 = vmatmul.mubr.msk.f32.gmra.mrb[28].mxu1 %vm430_vm3, %v2862_v17  ;;  %v3953_v17 = vld [vmem:[%s7291_s8] sm:$0xff] }
 0x399   : > { %5445 = vmatprep.mubr.msk.f32.mxu1 %vm6129_vm0, %v6130_v4 }
 0x39c   : > { %5446 = vmatmul.mubr.msk.f32.gmra.mrb[30].mxu1 %vm430_vm3, %v2863_v18  ;;  %v3954_v18 = vld [vmem:[%s7291_s8 + $0x8] sm:$0xff] }
 0x39d   : > { %5448 = vmatprep.mubr.msk.f32.mxu1 %vm6129_vm0, %v6130_v4  ;;  %v5695_v19 = vpack.c.bf16 %v3954_v18, %v3953_v17 }
 0x3a0   : > { %5449 = vmatmul.mubr.msk.f32.gmra.mrb[32].mxu1 %vm430_vm3, %v2864_v39 }
 0x3a1   : > { %5455 = vmatprep.mubr.msk.f32.mxu1 %vm6129_vm0, %v6130_v4 }
 0x3a4   : > { %5456 = vmatmul.mubr.msk.f32.vlgmr.msra.gmra.mrb[0].mxu1 %vm430_vm3, %v3086_v21 }
 0x3a5   : > { %5458 = vmatprep.mubr.msk.f32.mxu1 %vm6129_vm0, %v6130_v4  ;;  %5666 = vmatpush3.bf16.msra.mxu1 %v5665_v20  ;;  %v7150_v20 = vld [vmem:[%s7290_s7] ss:$0 sm:$0xff] }
 0x3a6   : > { %5667 = vmatprep.subr.bf16.mxu1 %v6128_v2 }
 0x3a8   : > { %5459 = vmatmul.mubr.msk.f32.gmra.mrb[2].mxu1 %vm430_vm3, %v3087_v22 }
 0x3a9   : > { %5461 = vmatprep.mubr.msk.f32.mxu1 %vm6129_vm0, %v6130_v4 }
 0x3ac   : > { %5462 = vmatmul.mubr.msk.f32.gmra.mrb[4].mxu1 %vm430_vm3, %v3088_v23 }
 0x3ad   : > { %5464 = vmatprep.mubr.msk.f32.mxu1 %vm6129_vm0, %v6130_v4 }
 0x3b0   : > { %5465 = vmatmul.mubr.msk.f32.gmra.mrb[6].mxu1 %vm430_vm3, %v3089_v24 }
 0x3b1   : > { %5467 = vmatprep.mubr.msk.f32.mxu1 %vm6129_vm0, %v6130_v4 }
 0x3b4   : > { %5468 = vmatmul.mubr.msk.f32.gmra.mrb[8].mxu1 %vm430_vm3, %v3090_v25 }
 0x3b5   : > { %5470 = vmatprep.mubr.msk.f32.mxu1 %vm6129_vm0, %v6130_v4 }
 0x3b8   : > { %5471 = vmatmul.mubr.msk.f32.gmra.mrb[10].mxu1 %vm430_vm3, %v3091_v26 }
 0x3b9   : > { %5473 = vmatprep.mubr.msk.f32.mxu1 %vm6129_vm0, %v6130_v4 }
 0x3bc   : > { %5474 = vmatmul.mubr.msk.f32.gmra.mrb[12].mxu1 %vm430_vm3, %v3092_v27 }
 0x3bd   : > { %5476 = vmatprep.mubr.msk.f32.mxu1 %vm6129_vm0, %v6130_v4 }
 0x3c0   : > { %5477 = vmatmul.mubr.msk.f32.gmra.mrb[14].mxu1 %vm430_vm3, %v3093_v28 }
 0x3c1   : > { %5479 = vmatprep.mubr.msk.f32.mxu1 %vm6129_vm0, %v6130_v4 }
 0x3c4   : > { %5480 = vmatmul.mubr.msk.f32.gmra.mrb[16].mxu1 %vm430_vm3, %v3094_v29 }
 0x3c5   : > { %5482 = vmatprep.mubr.msk.f32.mxu1 %vm6129_vm0, %v6130_v4 }
 0x3c8   : > { %5483 = vmatmul.mubr.msk.f32.gmra.mrb[18].mxu1 %vm430_vm3, %v3095_v30 }
 0x3c9   : > { %5485 = vmatprep.mubr.msk.f32.mxu1 %vm6129_vm0, %v6130_v4 }
 0x3cc   : > { %5486 = vmatmul.mubr.msk.f32.gmra.mrb[20].mxu1 %vm430_vm3, %v3096_v31 }
 0x3cd   : > { %5488 = vmatprep.mubr.msk.f32.mxu1 %vm6129_vm0, %v6130_v4 }
 0x3d0   : > { %5489 = vmatmul.mubr.msk.f32.gmra.mrb[22].mxu1 %vm430_vm3, %v3097_v32 }
 0x3d1   : > { %5491 = vmatprep.mubr.msk.f32.mxu1 %vm6129_vm0, %v6130_v4 }
 0x3d4   : > { %5492 = vmatmul.mubr.msk.f32.gmra.mrb[24].mxu1 %vm430_vm3, %v3098_v33 }
 0x3d5   : > { %5494 = vmatprep.mubr.msk.f32.mxu1 %vm6129_vm0, %v6130_v4 }
 0x3d8   : > { %5495 = vmatmul.mubr.msk.f32.gmra.mrb[26].mxu1 %vm430_vm3, %v3099_v34 }
 0x3d9   : > { %5497 = vmatprep.mubr.msk.f32.mxu1 %vm6129_vm0, %v6130_v4 }
 0x3dc   : > { %5498 = vmatmul.mubr.msk.f32.gmra.mrb[28].mxu1 %vm430_vm3, %v3100_v35 }
 0x3dd   : > { %5500 = vmatprep.mubr.msk.f32.mxu1 %vm6129_vm0, %v6130_v4 }
 0x3e0   : > { %5501 = vmatmul.mubr.msk.f32.gmra.mrb[30].mxu1 %vm430_vm3, %v3101_v36 }
 0x3e1   : > { %5503 = vmatprep.mubr.msk.f32.mxu1 %vm6129_vm0, %v6130_v4 }
 0x3e4   : > { %5504 = vmatmul.mubr.msk.f32.gmra.mrb[32].mxu1 %vm430_vm3, %v3102_v41 }
 0x3e5   : > { %5510 = vmatprep.mubr.msk.f32.mxu1 %vm6129_vm0, %v6130_v4 }
 0x3e8   : > { %5511 = vmatmul.mubr.msk.f32.vlgmr.msra.gmra.mrb[0].mxu1 %vm430_vm3, %v3324_v43 }
 0x3e9   : > { %5513 = vmatprep.mubr.msk.f32.mxu1 %vm6129_vm0, %v6130_v4  ;;  %5669 = vmatpush3.bf16.msra.mxu1 %v5668_v42 }
 0x3ea   : > { %5694 = vmatprep.subr.bf16.mxu1 %v6128_v2 }
 0x3ec   : > { %5514 = vmatmul.mubr.msk.f32.gmra.mrb[2].mxu1 %vm430_vm3, %v3325_v44 }
 0x3ed   : > { %5516 = vmatprep.mubr.msk.f32.mxu1 %vm6129_vm0, %v6130_v4 }
 0x3f0   : > { %5517 = vmatmul.mubr.msk.f32.gmra.mrb[4].mxu1 %vm430_vm3, %v3326_v45 }
 0x3f1   : > { %5519 = vmatprep.mubr.msk.f32.mxu1 %vm6129_vm0, %v6130_v4 }
 0x3f4   : > { %5520 = vmatmul.mubr.msk.f32.gmra.mrb[6].mxu1 %vm430_vm3, %v3327_v46 }
 0x3f5   : > { %5522 = vmatprep.mubr.msk.f32.mxu1 %vm6129_vm0, %v6130_v4 }
 0x3f8   : > { %5523 = vmatmul.mubr.msk.f32.gmra.mrb[8].mxu1 %vm430_vm3, %v3328_v47 }
 0x3f9   : > { %5525 = vmatprep.mubr.msk.f32.mxu1 %vm6129_vm0, %v6130_v4 }
 0x3fc   : > { %5526 = vmatmul.mubr.msk.f32.gmra.mrb[10].mxu1 %vm430_vm3, %v3329_v48 }
 0x3fd   : > { %5528 = vmatprep.mubr.msk.f32.mxu1 %vm6129_vm0, %v6130_v4 }
 0x400   : > { %5529 = vmatmul.mubr.msk.f32.gmra.mrb[12].mxu1 %vm430_vm3, %v3330_v49 }
 0x401   : > { %5531 = vmatprep.mubr.msk.f32.mxu1 %vm6129_vm0, %v6130_v4 }
 0x404   : > { %5532 = vmatmul.mubr.msk.f32.gmra.mrb[14].mxu1 %vm430_vm3, %v3331_v50 }
 0x405   : > { %5534 = vmatprep.mubr.msk.f32.mxu1 %vm6129_vm0, %v6130_v4 }
 0x408   : > { %5535 = vmatmul.mubr.msk.f32.gmra.mrb[16].mxu1 %vm430_vm3, %v3332_v51 }
 0x409   : > { %5537 = vmatprep.mubr.msk.f32.mxu1 %vm6129_vm0, %v6130_v4 }
 0x40c   : > { %5538 = vmatmul.mubr.msk.f32.gmra.mrb[18].mxu1 %vm430_vm3, %v3333_v52 }
 0x40d   : > { %5540 = vmatprep.mubr.msk.f32.mxu1 %vm6129_vm0, %v6130_v4 }
 0x410   : > { %5541 = vmatmul.mubr.msk.f32.gmra.mrb[20].mxu1 %vm430_vm3, %v3334_v53 }
 0x411   : > { %5543 = vmatprep.mubr.msk.f32.mxu1 %vm6129_vm0, %v6130_v4 }
 0x414   : > { %5544 = vmatmul.mubr.msk.f32.gmra.mrb[22].mxu1 %vm430_vm3, %v3335_v54 }
 0x415   : > { %5546 = vmatprep.mubr.msk.f32.mxu1 %vm6129_vm0, %v6130_v4 }
 0x418   : > { %5547 = vmatmul.mubr.msk.f32.gmra.mrb[24].mxu1 %vm430_vm3, %v3336_v55 }
 0x419   : > { %5549 = vmatprep.mubr.msk.f32.mxu1 %vm6129_vm0, %v6130_v4 }
 0x41c   : > { %5550 = vmatmul.mubr.msk.f32.gmra.mrb[26].mxu1 %vm430_vm3, %v3337_v56 }
 0x41d   : > { %5552 = vmatprep.mubr.msk.f32.mxu1 %vm6129_vm0, %v6130_v4 }
 0x420   : > { %5553 = vmatmul.mubr.msk.f32.gmra.mrb[28].mxu1 %vm430_vm3, %v3338_v57 }
 0x421   : > { %5555 = vmatprep.mubr.msk.f32.mxu1 %vm6129_vm0, %v6130_v4 }
 0x424   : > { %5556 = vmatmul.mubr.msk.f32.gmra.mrb[30].mxu1 %vm430_vm3, %v3339_v58 }
 0x425   : > { %5558 = vmatprep.mubr.msk.f32.mxu1 %vm6129_vm0, %v6130_v4 }
 0x428   : > { %5559 = vmatmul.mubr.msk.f32.gmra.mrb[32].mxu1 %vm430_vm3, %v3340_v59 }
 0x429   : > { %5565 = vmatprep.mubr.msk.f32.mxu1 %vm6129_vm0, %v6130_v4 }
 0x42c   : > { %5566 = vmatmul.mubr.msk.f32.vlgmr.msra.gmra.mrb[0].mxu1 %vm430_vm3, %v3562_v60 }
 0x42d   : > { %5568 = vmatprep.mubr.msk.f32.mxu1 %vm6129_vm0, %v6130_v4  ;;  %5696 = vmatpush3.bf16.msra.mxu1 %v5695_v19 }
 0x430   : > { %5569 = vmatmul.mubr.msk.f32.gmra.mrb[2].mxu1 %vm430_vm3, %v3563_v61 }
 0x431   : > { %5571 = vmatprep.mubr.msk.f32.mxu1 %vm6129_vm0, %v6130_v4 }
 0x434   : > { %5572 = vmatmul.mubr.msk.f32.gmra.mrb[4].mxu1 %vm430_vm3, %v3564_v62 }
 0x435   : > { %5574 = vmatprep.mubr.msk.f32.mxu1 %vm6129_vm0, %v6130_v4 }
 0x438   : > { %5575 = vmatmul.mubr.msk.f32.gmra.mrb[6].mxu1 %vm430_vm3, %v3565_v63 }
 0x439   : > { %5577 = vmatprep.mubr.msk.f32.mxu1 %vm6129_vm0, %v6130_v4 }
 0x43c   : > { %5578 = vmatmul.mubr.msk.f32.gmra.mrb[8].mxu1 %vm430_vm3, %v3566_v0 }
 0x43d   : > { %5580 = vmatprep.mubr.msk.f32.mxu1 %vm6129_vm0, %v6130_v4 }
 0x440   : > { %5581 = vmatmul.mubr.msk.f32.gmra.mrb[10].mxu1 %vm430_vm3, %v3567_v1 }
 0x441   : > { %5583 = vmatprep.mubr.msk.f32.mxu1 %vm6129_vm0, %v6130_v4 }
 0x444   : > { %5584 = vmatmul.mubr.msk.f32.gmra.mrb[12].mxu1 %vm430_vm3, %v3568_v3 }
 0x445   : > { %5586 = vmatprep.mubr.msk.f32.mxu1 %vm6129_vm0, %v6130_v4 }
 0x448   : > { %5587 = vmatmul.mubr.msk.f32.gmra.mrb[14].mxu1 %vm430_vm3, %v3569_v5 }
 0x449   : > { %5589 = vmatprep.mubr.msk.f32.mxu1 %vm6129_vm0, %v6130_v4 }
 0x44c   : > { %5590 = vmatmul.mubr.msk.f32.gmra.mrb[16].mxu1 %vm430_vm3, %v3570_v6 }
 0x44d   : > { %5592 = vmatprep.mubr.msk.f32.mxu1 %vm6129_vm0, %v6130_v4 }
 0x450   : > { %5593 = vmatmul.mubr.msk.f32.gmra.mrb[18].mxu1 %vm430_vm3, %v3571_v7 }
 0x451   : > { %5595 = vmatprep.mubr.msk.f32.mxu1 %vm6129_vm0, %v6130_v4 }
 0x454   : > { %5596 = vmatmul.mubr.msk.f32.gmra.mrb[20].mxu1 %vm430_vm3, %v3572_v8 }
 0x455   : > { %5598 = vmatprep.mubr.msk.f32.mxu1 %vm6129_vm0, %v6130_v4 }
 0x458   : > { %5599 = vmatmul.mubr.msk.f32.gmra.mrb[22].mxu1 %vm430_vm3, %v3573_v9 }
 0x459   : > { %5601 = vmatprep.mubr.msk.f32.mxu1 %vm6129_vm0, %v6130_v4 }
 0x45c   : > { %5602 = vmatmul.mubr.msk.f32.gmra.mrb[24].mxu1 %vm430_vm3, %v3574_v10 }
 0x45d   : > { %5604 = vmatprep.mubr.msk.f32.mxu1 %vm6129_vm0, %v6130_v4 }
 0x460   : > { %5605 = vmatmul.mubr.msk.f32.gmra.mrb[26].mxu1 %vm430_vm3, %v3575_v11 }
 0x461   : > { %5607 = vmatprep.mubr.msk.f32.mxu1 %vm6129_vm0, %v6130_v4 }
 0x464   : > { %5608 = vmatmul.mubr.msk.f32.gmra.mrb[28].mxu1 %vm430_vm3, %v3576_v12 }
 0x465   : > { %5610 = vmatprep.mubr.msk.f32.mxu1 %vm6129_vm0, %v6130_v4 }
 0x468   : > { %5611 = vmatmul.mubr.msk.f32.gmra.mrb[30].mxu1 %vm430_vm3, %v3577_v13 }
 0x469   : > { %5613 = vmatprep.mubr.msk.f32.mxu1 %vm6129_vm0, %v6130_v4 }
 0x46c   : > { %5614 = vmatmul.mubr.msk.f32.gmra.mrb[32].mxu1 %vm430_vm3, %v3578_v14 }
 0x46d   : > { %5620 = vmatprep.mubr.msk.f32.mxu1 %vm6129_vm0, %v6130_v4 }
 0x4ff   : > { %v3699_v39 = vpop.f32.mrb[0].mxu1 }
 0x500   : > { %v3807_v21 = vmul.f32 %v7145_v37, %v3699_v39  ;;  %v5567_v22 = vpop.f32.mrb[1].mxu1 }
 0x502   : > { %v3831_v23 = vadd.f32 %v7150_v20, %v3807_v21 }
 0x503   : > { %v3704_v24 = vpop.f32.mrb[2].mxu1 }
 0x504   : > { %v3848_v25 = vmax.f32 %v3831_v23, 0.0  ;;  %v3808_v26 = vmul.f32 %v7145_v37, %v3704_v24  ;;  %v5570_v27 = vpop.f32.mrb[3].mxu1 }
 0x506   : > { %4128 = vst.msk [vmem:[#allocation2 + $0x3] sm:$0xff] %vm430_vm3, %v3848_v25  ;;  %v3832_v28 = vadd.f32 %v7150_v20, %v3808_v26 }
 0x507   : > { %v3709_v29 = vpop.f32.mrb[4].mxu1 }
 0x508   : > { %v3849_v30 = vmax.f32 %v3832_v28, 0.0  ;;  %v3809_v31 = vmul.f32 %v7145_v37, %v3709_v29  ;;  %v5573_v32 = vpop.f32.mrb[5].mxu1 }
 0x50a   : > { %v5671_v33 = vpack.c.bf16 %v3849_v30, %v3848_v25  ;;  %4129 = vst.msk [vmem:[#allocation2 + $0xb] sm:$0xff] %vm430_vm3, %v3849_v30  ;;  %v3833_v34 = vadd.f32 %v7150_v20, %v3809_v31 }
 0x50b   : > { %v3714_v35 = vpop.f32.mrb[6].mxu1 }
 0x50c   : > { %v3850_v36 = vmax.f32 %v3833_v34, 0.0  ;;  %v3810_v38 = vmul.f32 %v7145_v37, %v3714_v35  ;;  %v5576_v40 = vpop.f32.mrb[7].mxu1  ;;  %5672 = vmatpush1.bf16.msra.mxu0 %v5671_v33 }
 0x50d   : > { %5673 = vmatprep.subr.bf16.mxu0 %v6128_v2 }
 0x50e   : > { %4130 = vst.msk [vmem:[#allocation2 + $0x13] sm:$0xff] %vm430_vm3, %v3850_v36  ;;  %v3834_v41 = vadd.f32 %v7150_v20, %v3810_v38 }
 0x50f   : > { %v3719_v42 = vpop.f32.mrb[8].mxu1 }
 0x510   : > { %v3851_v43 = vmax.f32 %v3834_v41, 0.0  ;;  %v3811_v44 = vmul.f32 %v7145_v37, %v3719_v42  ;;  %v5579_v45 = vpop.f32.mrb[9].mxu1 }
 0x512   : > { %v5674_v46 = vpack.c.bf16 %v3851_v43, %v3850_v36  ;;  %4131 = vst.msk [vmem:[#allocation2 + $0x1b] sm:$0xff] %vm430_vm3, %v3851_v43  ;;  %v3835_v47 = vadd.f32 %v7150_v20, %v3811_v44 }
 0x513   : > { %v3724_v48 = vpop.f32.mrb[10].mxu1 }
 0x514   : > { %v3852_v49 = vmax.f32 %v3835_v47, 0.0  ;;  %v3812_v50 = vmul.f32 %v7145_v37, %v3724_v48  ;;  %v5582_v51 = vpop.f32.mrb[11].mxu1  ;;  %5675 = vmatpush1.bf16.msra.mxu0 %v5674_v46 }
 0x515   : > { %5676 = vmatprep.subr.bf16.mxu0 %v6128_v2 }
 0x516   : > { %4132 = vst.msk [vmem:[#allocation2 + $0x23] sm:$0xff] %vm430_vm3, %v3852_v49  ;;  %v3836_v52 = vadd.f32 %v7150_v20, %v3812_v50 }
 0x517   : > { %v3729_v53 = vpop.f32.mrb[12].mxu1 }
 0x518   : > { %v3853_v54 = vmax.f32 %v3836_v52, 0.0  ;;  %v3813_v55 = vmul.f32 %v7145_v37, %v3729_v53  ;;  %v5585_v56 = vpop.f32.mrb[13].mxu1 }
 0x519   : > { %v4567_v56 = vld [vmem:[%s7292_s9] ss:$0 sm:$0xff] }
 0x51a   : > { %v5677_v57 = vpack.c.bf16 %v3853_v54, %v3852_v49  ;;  %4133 = vst.msk [vmem:[#allocation2 + $0x2b] sm:$0xff] %vm430_vm3, %v3853_v54  ;;  %v3837_v58 = vadd.f32 %v7150_v20, %v3813_v55 }
 0x51b   : > { %v3734_v59 = vpop.f32.mrb[14].mxu1 }
 0x51c   : > { %v3854_v60 = vmax.f32 %v3837_v58, 0.0  ;;  %v3814_v61 = vmul.f32 %v7145_v37, %v3734_v59  ;;  %v5588_v62 = vpop.f32.mrb[15].mxu1  ;;  %5678 = vmatpush1.bf16.msra.mxu0 %v5677_v57  ;;  %v4569_v59 = vld [vmem:[%s7294_s11] ss:$0 sm:$0xff] }
 0x51d   : > { %5679 = vmatprep.subr.bf16.mxu0 %v6128_v2 }
 0x51e   : > { %4134 = vst.msk [vmem:[#allocation2 + $0x33] sm:$0xff] %vm430_vm3, %v3854_v60  ;;  %v3838_v63 = vadd.f32 %v7150_v20, %v3814_v61 }
 0x51f   : > { %v3739_v0 = vpop.f32.mrb[16].mxu1 }
 0x520   : > { %v3855_v1 = vmax.f32 %v3838_v63, 0.0  ;;  %v3815_v3 = vmul.f32 %v7145_v37, %v3739_v0  ;;  %v5591_v5 = vpop.f32.mrb[17].mxu1 }
 0x521   : > { %v4145_v5 = vld [vmem:[%s6229_s13] sm:$0xff] }
 0x522   : > { %v5680_v6 = vpack.c.bf16 %v3855_v1, %v3854_v60  ;;  %4135 = vst.msk [vmem:[#allocation2 + $0x3b] sm:$0xff] %vm430_vm3, %v3855_v1  ;;  %v3839_v7 = vadd.f32 %v7150_v20, %v3815_v3  ;;  %v4169_v3 = vlaneseq }
 0x523   : > { %v3744_v8 = vpop.f32.mrb[18].mxu1 }
 0x524   : > { %v3856_v9 = vmax.f32 %v3839_v7, 0.0  ;;  %v3816_v10 = vmul.f32 %v7145_v37, %v3744_v8  ;;  %v5594_v11 = vpop.f32.mrb[19].mxu1  ;;  %5681 = vmatpush1.bf16.msra.mxu0 %v5680_v6  ;;  %v4146_v6 = vld [vmem:[%s6229_s13 + $0x8] sm:$0xff]  ;;  %v4170_v7 = vshrl.u32 %v4169_v3, 7  ;;  %v4147_v8 = vld [vmem:[%s6229_s13 + $0x10] sm:$0xff] }
 0x525   : > { %5682 = vmatprep.subr.bf16.mxu0 %v6128_v2  ;;  %v4150_v11 = vld [vmem:[%s6229_s13 + $0x28] sm:$0xff] }
 0x526   : > { %4136 = vst.msk [vmem:[#allocation2 + $0x43] sm:$0xff] %vm430_vm3, %v3856_v9  ;;  %v3840_v12 = vadd.f32 %v7150_v20, %v3816_v10  ;;  %v4149_v10 = vld [vmem:[%s6229_s13 + $0x20] sm:$0xff] }
 0x527   : > { %v3749_v13 = vpop.f32.mrb[20].mxu1 }
 0x528   : > { %v3857_v14 = vmax.f32 %v3840_v12, 0.0  ;;  %v3817_v16 = vmul.f32 %v7145_v37, %v3749_v13  ;;  %v5597_v17 = vpop.f32.mrb[21].mxu1  ;;  %v4153_v12 = vld [vmem:[#allocation2 + $0x3] sm:$0xff]  ;;  %v4151_v13 = vld [vmem:[%s6229_s13 + $0x30] sm:$0xff] }
 0x529   : > { %v4155_v17 = vld [vmem:[#allocation2 + $0x13] sm:$0xff] }
 0x52a   : > { %v5683_v18 = vpack.c.bf16 %v3857_v14, %v3856_v9  ;;  %4137 = vst.msk [vmem:[#allocation2 + $0x4b] sm:$0xff] %vm430_vm3, %v3857_v14  ;;  %v3841_v19 = vadd.f32 %v7150_v20, %v3817_v16  ;;  %v4148_v9 = vld [vmem:[%s6229_s13 + $0x18] sm:$0xff]  ;;  %v4154_v16 = vld [vmem:[#allocation2 + $0xb] sm:$0xff] }
 0x52b   : > { %v3754_v39 = vpop.f32.mrb[22].mxu1  ;;  %v4152_v14 = vld [vmem:[%s6229_s13 + $0x38] sm:$0xff] }
 0x52c   : > { %v3858_v21 = vmax.f32 %v3841_v19, 0.0  ;;  %v3818_v22 = vmul.f32 %v7145_v37, %v3754_v39  ;;  %v5600_v23 = vpop.f32.mrb[23].mxu1  ;;  %5684 = vmatpush1.bf16.msra.mxu0 %v5683_v18  ;;  %v4156_v18 = vld [vmem:[#allocation2 + $0x1b] sm:$0xff]  ;;  %v4190_v39 = vld [vmem:[%s6229_s13 + $0x48] sm:$0xff] }
 0x52d   : > { %5685 = vmatprep.subr.bf16.mxu0 %v6128_v2  ;;  %v4189_v19 = vld [vmem:[%s6229_s13 + $0x40] sm:$0xff]  ;;  %v4159_v23 = vld [vmem:[#allocation2 + $0x33] sm:$0xff] }
 0x52e   : > { %4138 = vst.msk [vmem:[#allocation2 + $0x53] sm:$0xff] %vm430_vm3, %v3858_v21  ;;  %v3842_v24 = vadd.f32 %v7150_v20, %v3818_v22  ;;  %v4158_v22 = vld [vmem:[#allocation2 + $0x2b] sm:$0xff] }
 0x52f   : > { %v3759_v25 = vpop.f32.mrb[24].mxu1 }
 0x530   : > { %v3859_v26 = vmax.f32 %v3842_v24, 0.0  ;;  %v3819_v27 = vmul.f32 %v7145_v37, %v3759_v25  ;;  %v5603_v28 = vpop.f32.mrb[25].mxu1  ;;  %v4191_v24 = vld [vmem:[%s6229_s13 + $0x50] sm:$0xff]  ;;  %v4192_v25 = vld [vmem:[%s6229_s13 + $0x58] sm:$0xff] }
 0x531   : > { %v4193_v28 = vld [vmem:[%s6229_s13 + $0x60] sm:$0xff] }
 0x532   : > { %v5686_v29 = vpack.c.bf16 %v3859_v26, %v3858_v21  ;;  %4139 = vst.msk [vmem:[#allocation2 + $0x5b] sm:$0xff] %vm430_vm3, %v3859_v26  ;;  %v3843_v30 = vadd.f32 %v7150_v20, %v3819_v27  ;;  %v4157_v21 = vld [vmem:[#allocation2 + $0x23] sm:$0xff]  ;;  %v4160_v26 = vld [vmem:[#allocation2 + $0x3b] sm:$0xff]  ;;  %v4171_v27 = vsub.s32 0, %v4170_v7 }
 0x533   : > { %v3764_v31 = vpop.f32.mrb[26].mxu1 }
 0x534   : > { %v3860_v32 = vmax.f32 %v3843_v30, 0.0  ;;  %v3820_v33 = vmul.f32 %v7145_v37, %v3764_v31  ;;  %v5606_v34 = vpop.f32.mrb[27].mxu1  ;;  %5687 = vmatpush1.bf16.msra.mxu0 %v5686_v29  ;;  %v4194_v29 = vld [vmem:[%s6229_s13 + $0x68] sm:$0xff]  ;;  %v4195_v30 = vld [vmem:[%s6229_s13 + $0x70] sm:$0xff]  ;;  %v4196_v31 = vld [vmem:[%s6229_s13 + $0x78] sm:$0xff] }
 0x535   : > { %5688 = vmatprep.subr.bf16.mxu0 %v6128_v2  ;;  %v4215_v34 = vsub.s32 1, %v4170_v7 }
 0x536   : > { %4140 = vst.msk [vmem:[#allocation2 + $0x63] sm:$0xff] %vm430_vm3, %v3860_v32  ;;  %v3844_v35 = vadd.f32 %v7150_v20, %v3820_v33  ;;  %v4198_v33 = vld [vmem:[#allocation2 + $0x51] sm:$0xff] }
 0x537   : > { %v3769_v36 = vpop.f32.mrb[28].mxu1 }
 0x538   : > { %v3861_v38 = vmax.f32 %v3844_v35, 0.0  ;;  %v3821_v40 = vmul.f32 %v7145_v37, %v3769_v36  ;;  %v5609_v41 = vpop.f32.mrb[29].mxu1  ;;  %v4161_v35 = vadd.f32 %v4153_v12, %v4145_v5  ;;  %v4162_v36 = vadd.f32 %v4154_v16, %v4146_v6 }
 0x53a   : > { %v5689_v42 = vpack.c.bf16 %v3861_v38, %v3860_v32  ;;  %4141 = vst.msk [vmem:[#allocation2 + $0x6b] sm:$0xff] %vm430_vm3, %v3861_v38  ;;  %v3845_v43 = vadd.f32 %v7150_v20, %v3821_v40  ;;  %v4197_v32 = vld [vmem:[#allocation2 + $0x49] sm:$0xff]  ;;  %v4199_v38 = vld [vmem:[#allocation2 + $0x59] sm:$0xff] }
 0x53b   : > { %v3774_v44 = vpop.f32.mrb[30].mxu1 }
 0x53c   : > { %v3862_v45 = vmax.f32 %v3845_v43, 0.0  ;;  %v3822_v46 = vmul.f32 %v7145_v37, %v3774_v44  ;;  %v5612_v47 = vpop.f32.mrb[31].mxu1  ;;  %5690 = vmatpush1.bf16.msra.mxu0 %v5689_v42  ;;  %v4163_v42 = vadd.f32 %v4155_v17, %v4147_v8  ;;  %v4164_v43 = vadd.f32 %v4156_v18, %v4148_v9 }
 0x53d   : > { %5691 = vmatprep.subr.bf16.mxu0 %v6128_v2  ;;  %v4200_v40 = vld [vmem:[#allocation2 + $0x61] sm:$0xff]  ;;  %v4165_v44 = vadd.f32 %v4157_v21, %v4149_v10 }
 0x53e   : > { %4142 = vst.msk [vmem:[#allocation2 + $0x73] sm:$0xff] %vm430_vm3, %v3862_v45  ;;  %v3846_v48 = vadd.f32 %v7150_v20, %v3822_v46 }
 0x53f   : > { %v3779_v49 = vpop.f32.mrb[32].mxu1 }
 0x540   : > { %v3863_v50 = vmax.f32 %v3846_v48, 0.0  ;;  %v3823_v51 = vmul.f32 %v7145_v37, %v3779_v49  ;;  %v5615_v52 = vpop.f32.mrb[33].mxu1 }
 0x541   : > { %v4201_v41 = vld [vmem:[#allocation2 + $0x69] sm:$0xff]  ;;  %v4205_v52 = vadd.f32 %v4197_v32, %v4189_v19 }
 0x542   : > { %v5692_v53 = vpack.c.bf16 %v3863_v50, %v3862_v45  ;;  %4143 = vst.msk [vmem:[#allocation2 + $0x7b] sm:$0xff] %vm430_vm3, %v3863_v50  ;;  %v3847_v54 = vadd.f32 %v7150_v20, %v3823_v51  ;;  %v4036_v20 = vld [vmem:[%s7293_s10] sm:$0x3]  ;;  %v4166_v45 = vadd.f32 %v4158_v22, %v4150_v11  ;;  %v4167_v50 = vadd.f32 %v4159_v23, %v4151_v13 }
 0x543   : > { %v4168_v51 = vadd.f32 %v4160_v26, %v4152_v14 }
 0x544   : > { %v3864_v55 = vmax.f32 %v3847_v54, 0.0  ;;  %5693 = vmatpush1.bf16.msra.mxu0 %v5692_v53  ;;  %v4206_v53 = vadd.f32 %v4198_v33, %v4190_v39 }
 0x545   : > { %3915 = vmatprep.subr.mxu0 %v6130_v4  ;;  %v4202_v46 = vld [vmem:[#allocation2 + $0x71] sm:$0xff] }
 0x546   : > { %4144 = vst.msk [vmem:[#allocation2 + $0x83] sm:$0x3f] %vm419_vm2, %v3864_v55 }
 0x548   : > { %4565 = vmatpush1.msk.msra.mxu0 %vm3879_vm5, %v3864_v55  ;;  %v4207_v55 = vadd.f32 %v4199_v38, %v4191_v24 }
 0x549   : > { %3948 = vmatmul.mubr.f32.vlgmr.msra.gmra.mrb[34].mxu0 %v7132_v15  ;;  %5623 = vmatprep.subr.mxu0 %v6130_v4  ;;  %v4203_v47 = vld [vmem:[#allocation2 + $0x79] sm:$0xff] }
 0x54a   : > { %5625 = vmatprep.mubr.msk.f32.mxu0 %vm6129_vm0, %v6130_v4  ;;  %5624 = vmatpush3.msk.msra.mxu0 %vm4048_vm6, %v4036_v20  ;;  %v4209_v20 = vadd.f32 %v4201_v41, %v4193_v28 }
 0x54d   : > { %v4204_v48 = vld [vmem:[#allocation2 + $0x81] sm:$0xff] }
 0x61c   : > { %v3949_v2 = vpop.f32.mrb[34].mxu0 }
 0x61d   : > { %5621 = vmatmul.mubr.msk.f32.vlgmr.msra.gmra.mrb[34].mxu1 %vm430_vm3, %v3949_v2  ;;  %v3951_v37 = vpop.f32.mrb[35].mxu0  ;;  %v4208_v2 = vadd.f32 %v4200_v40, %v4192_v25 }
 0x6f0   : > { %v4031_v15 = vpop.f32.mrb[34].mxu1 }
 0x6f1   : > { %v4032_v57 = vadd.f32 %v4567_v56, %v4031_v15  ;;  %v5622_v58 = vpop.f32.mrb[35].mxu1  ;;  %v4210_v56 = vadd.f32 %v4202_v46, %v4194_v29  ;;  %v4211_v15 = vadd.f32 %v4203_v47, %v4195_v30 }
 0x6f3   : > { %v4035_v4 = vmax.f32 %v4032_v57, 0.0  ;;  %v4212_v57 = vadd.f32 %v4204_v48, %v4196_v31 }
 0x6f5   : > { %5626 = vmatmul.mubr.msk.f32.vlgmr.msra.gmra.mrb[36].mxu0 %vm4044_vm7, %v4035_v4 }
 0x7c8   : > { %v4118_v60 = vpop.f32.mrb[36].mxu0 }
 0x7c9   : > { %v4119_v61 = vadd.f32 %v4569_v59, %v4118_v60  ;;  %v5627_v62 = vpop.f32.mrb[37].mxu0 }
 0x7cb   : > { %v4572_v63 = vmul.f32 -1.442695, %v4119_v61 }
 0x7cd   : > { %6116 = vpow2.f32 %v4572_v63 }
 0x7d7   : > { %v6117_v0 = vpop.eup %6116 }
 0x7d8   : > { %v4125_v1 = vadd.f32 1.0, %v6117_v0 }
 0x7da   : > { %6118 = vrcp.f32 %v4125_v1 }
 0x7e4   : > { %v6119_v49 = vpop.eup %6118 }
 0x7e5   : > { %v4172_v54 = vrot.slane %v6119_v49, %v4171_v27  ;;  %v4216_v37 = vrot.slane %v6119_v49, %v4215_v34 }
 0x7e7   : > { %v4173_v58 = vadd.f32 %v4172_v54, %v4161_v35  ;;  %v4174_v4 = vadd.f32 %v4172_v54, %v4162_v36  ;;  %v4175_v59 = vadd.f32 %v4172_v54, %v4163_v42  ;;  %v4176_v60 = vadd.f32 %v4172_v54, %v4164_v43 }
 0x7e8   : > { %v4177_v61 = vadd.f32 %v4172_v54, %v4165_v44  ;;  %v4178_v62 = vadd.f32 %v4172_v54, %v4166_v45  ;;  %v4179_v63 = vadd.f32 %v4172_v54, %v4167_v50  ;;  %v4180_v0 = vadd.f32 %v4172_v54, %v4168_v51 }
 0x7e9   : > { %4181 = vst.msk [vmem:[%s7246_s17] sm:$0xff] %vm430_vm3, %v4173_v58  ;;  %4182 = vst.msk [vmem:[%s7246_s17 + $0x8] sm:$0xff] %vm430_vm3, %v4174_v4  ;;  %v4217_v1 = vadd.f32 %v4216_v37, %v4205_v52  ;;  %v4218_v3 = vadd.f32 %v4216_v37, %v4206_v53  ;;  %v4219_v5 = vadd.f32 %v4216_v37, %v4207_v55 }
 0x7ea   : > { %4183 = vst.msk [vmem:[%s7246_s17 + $0x10] sm:$0xff] %vm430_vm3, %v4175_v59  ;;  %4184 = vst.msk [vmem:[%s7246_s17 + $0x18] sm:$0xff] %vm430_vm3, %v4176_v60  ;;  %v4220_v6 = vadd.f32 %v4216_v37, %v4208_v2  ;;  %v4221_v7 = vadd.f32 %v4216_v37, %v4209_v20  ;;  %v4222_v8 = vadd.f32 %v4216_v37, %v4210_v56 }
 0x7eb   : > { %4185 = vst.msk [vmem:[%s7246_s17 + $0x20] sm:$0xff] %vm430_vm3, %v4177_v61  ;;  %4186 = vst.msk [vmem:[%s7246_s17 + $0x28] sm:$0xff] %vm430_vm3, %v4178_v62  ;;  %v4223_v9 = vadd.f32 %v4216_v37, %v4211_v15  ;;  %v4224_v10 = vadd.f32 %v4216_v37, %v4212_v57 }
 0x7ec   : > { %4187 = vst.msk [vmem:[%s7246_s17 + $0x30] sm:$0xff] %vm430_vm3, %v4179_v63  ;;  %4188 = vst.msk [vmem:[%s7246_s17 + $0x38] sm:$0xff] %vm430_vm3, %v4180_v0 }
 0x7ed   : > { %4225 = vst.msk [vmem:[%s7246_s17 + $0x40] sm:$0xff] %vm430_vm3, %v4217_v1  ;;  %4226 = vst.msk [vmem:[%s7246_s17 + $0x48] sm:$0xff] %vm430_vm3, %v4218_v3 }
 0x7ee   : > { %4227 = vst.msk [vmem:[%s7246_s17 + $0x50] sm:$0xff] %vm430_vm3, %v4219_v5  ;;  %4228 = vst.msk [vmem:[%s7246_s17 + $0x58] sm:$0xff] %vm430_vm3, %v4220_v6 }
 0x7ef   : > { %4229 = vst.msk [vmem:[%s7246_s17 + $0x60] sm:$0xff] %vm430_vm3, %v4221_v7  ;;  %4230 = vst.msk [vmem:[%s7246_s17 + $0x68] sm:$0xff] %vm430_vm3, %v4222_v8 }
 0x7f0   : > { %4231 = vst.msk [vmem:[%s7246_s17 + $0x70] sm:$0xff] %vm430_vm3, %v4223_v9  ;;  %4232 = vst.msk [vmem:[%s7246_s17 + $0x78] sm:$0xff] %vm430_vm3, %v4224_v10 }
 0x7f1 PF: > { %s22_s21 = sadd.s32 1, %s6126_s21  }
 0x7f2   : > { %p19_p4 = scmp.ge.s32.totalorder %s22_s21, 4  }
 0x7f4   :  { %21 = sbr.rel (!%p19_p4) target bundleno = 1 (0x1), region = 110 }

</bundles_post_ra>
